<compile_context>
chip_gen: v7x
topology: tpu7x:2x2x1
jax: 0.10.0
libtpu: 0.0.40
codegen_flags: <defaults>
</compile_context>

<pallas_src>
import functools

import jax
import jax.numpy as jnp
from jax import lax
from jax.experimental import pallas as pl
from jax.experimental.pallas import tpu as pltpu

BN_EPS = 1e-5
NT_DIMS = (((1,), (1,)), ((), ()))   # contract last dims of both operands: a @ b.T


def _leaky(x, slope=0.01):
    return jnp.maximum(x, slope * x)


def _skip_connect(x, w, affine, h_c):
    """SkipConnectBlock on x: [M, c].

    w:      [c, 2*h_c + c]  fused (conv1 | conv2 | conv3) weights
    affine: [3, 2*h_c + c]  rows = (conv bias, BN scale, BN shift)
    """
    y = jnp.dot(x, w, preferred_element_type=jnp.float32) + affine[0:1, :]
    y = _leaky(y)
    y = y * affine[1:2, :] + affine[2:3, :]          # BatchNorm1d (eval) per channel
    x1 = y[:, :h_c]                                  # conv1 path  [M, h_c]
    x2 = y[:, h_c:2 * h_c]                           # conv2 path  [M, h_c]
    x3 = y[:, 2 * h_c:]                              # conv3 path  [M, c]
    # feat = X1 @ X2^T  (NT matmul, no explicit transpose materialized)
    feat = lax.dot_general(x1, x2, NT_DIMS, preferred_element_type=jnp.float32)  # [M, M]
    # torch Softmax(dim=1) on [1, M, M]  ==  softmax over axis 0 here (column softmax)
    fmax = jnp.max(feat, axis=0, keepdims=True)
    fexp = jnp.exp(feat - fmax)
    feat = fexp / jnp.sum(fexp, axis=0, keepdims=True)
    return jnp.dot(feat, x3, preferred_element_type=jnp.float32) + x


def _stage1_kernel(h_c, h_k,
                   x_ref, kb_ref,
                   w_s1_ref, a_s1_ref, w_s2_ref, a_s2_ref, w_s3_ref, a_s3_ref,
                   w_m12_ref, b_m12_ref, w_m3_ref, b_m3_ref, w_m4_ref, b_m4_ref,
                   aff_out_ref, score_out_ref):
    x = x_ref[...]                                   # [N, d]
    kb = kb_ref[...]                                 # [n_bag, d]

    xs = _skip_connect(x, w_s1_ref[...], a_s1_ref[...], h_c)      # [N, d]
    ks = _skip_connect(kb, w_s2_ref[...], a_s2_ref[...], h_c)     # [n_bag, d]

    # pairwise euclidean distances (sklearn dot-product formula, clamped at 0)
    cross = lax.dot_general(xs, ks, NT_DIMS, preferred_element_type=jnp.float32)  # [N, n_bag]
    sq_x = jnp.sum(xs * xs, axis=1, keepdims=True)                 # [N, 1]
    sq_k = jnp.sum(ks * ks, axis=1, keepdims=True)                 # [n_bag, 1]
    dist2 = sq_x - 2.0 * cross + sq_k.T
    aff = jnp.sqrt(jnp.maximum(dist2, 0.0))                        # [N, n_bag]

    aff_skip = _skip_connect(aff, w_s3_ref[...], a_s3_ref[...], h_c)   # [N, n_bag]
    aff_out_ref[...] = aff_skip.astype(aff_out_ref.dtype)

    # MaskBlock on affinity_skip (fc1 | fc2 fused into one matmul)
    z = (jnp.dot(aff_skip, w_m12_ref[...], preferred_element_type=jnp.float32)
         + b_m12_ref[...])                                         # [N, 2*h_k]
    x1m = _leaky(z[:, :h_k])                                       # [N, h_k]
    x2m = jnp.tanh(z[:, h_k:])                                     # [N, h_k]
    m = jnp.dot(x1m.T, x2m, preferred_element_type=jnp.float32)    # [h_k, h_k]
    f3 = _leaky(jnp.dot(m, w_m3_ref[...], preferred_element_type=jnp.float32)
                + b_m3_ref[...])                                   # [h_k, n_bag]
    # fc4 (Linear(h_k, 1)) as a VPU multiply + sublane reduce instead of a width-1 matmul
    scores = jnp.sum(f3 * w_m4_ref[...], axis=0, keepdims=True) + b_m4_ref[...]  # [1, n_bag]
    smax = jnp.max(scores, axis=1, keepdims=True)
    sexp = jnp.exp(scores - smax)
    score_out_ref[...] = (sexp / jnp.sum(sexp, axis=1, keepdims=True)
                          ).astype(score_out_ref.dtype)


def _stage2_kernel(n_bag, n_sample,
                   aff_ref, idx_ref, x_ref, w_emb_ref, b_emb_ref, out_ref):
    # column gather of affinity_skip via one-hot selection matmul
    col = lax.broadcasted_iota(jnp.int32, (n_bag, n_sample), 0)    # [n_bag, n_sample]
    sel = jnp.where(col == idx_ref[...], 1.0, 0.0).astype(jnp.float32)
    g = jnp.dot(aff_ref[...], sel, preferred_element_type=jnp.float32)   # [N, n_sample]
    # torch Softmax(dim=2) == row softmax over the selected columns
    gmax = jnp.max(g, axis=1, keepdims=True)
    gexp = jnp.exp(g - gmax)
    b_bag = gexp / jnp.sum(gexp, axis=1, keepdims=True)            # [N, n_sample]
    # torch.dstack([B, B_bag]) then Linear(d + n_sample, d) + LeakyReLU
    fused = jnp.concatenate([x_ref[...], b_bag], axis=1)           # [N, d + n_sample]
    out = (jnp.dot(fused, w_emb_ref[...], preferred_element_type=jnp.float32)
           + b_emb_ref[...])
    out_ref[...] = _leaky(out).astype(out_ref.dtype)


def make_knowledge_fuse_block(d, n_bag, h_c, h_k, n_sample):
    vmem = pl.BlockSpec(memory_space=pltpu.MemorySpace.VMEM)

    def forward(B, knowledge_bag, kp):
        n = B.shape[0]

        stage1 = pl.pallas_call(
            functools.partial(_stage1_kernel, h_c, h_k),
            out_shape=(
                jax.ShapeDtypeStruct((n, n_bag), jnp.float32),   # affinity_skip
                jax.ShapeDtypeStruct((1, n_bag), jnp.float32),   # mask scores (softmaxed)
            ),
            in_specs=[vmem] * 14,
            out_specs=(vmem, vmem),
        )
        aff_skip, scores = stage1(
            B, knowledge_bag,
            kp["w_skip1"], kp["aff_skip1"],
            kp["w_skip2"], kp["aff_skip2"],
            kp["w_skip3"], kp["aff_skip3"],
            kp["w_m12"], kp["b_m12"], kp["w_m3"], kp["b_m3"], kp["w_m4"], kp["b_m4"],
        )

        # TODO(synk): argsort / descending top-k has no clean Pallas TPU lowering;
        # the tiny (n_bag-element) sort is done in plain JAX between the two kernels.
        top_idx = jnp.argsort(-scores[0])[:n_sample].astype(jnp.int32)[None, :]  # [1, n_sample]

        stage2 = pl.pallas_call(
            functools.partial(_stage2_kernel, n_bag, n_sample),
            out_shape=jax.ShapeDtypeStruct((n, d), jnp.float32),
            in_specs=[vmem] * 5,
            out_specs=vmem,
        )
        out = stage2(aff_skip, top_idx, B, kp["w_emb"], kp["b_emb"])
        return out[None, :, :]        # [1, N, d] == torch B_fuse

    return jax.jit(forward)


# --------------------------------------------------------------------------
# Parameter construction (torch-like layout) + fusion into kernel operands.
# --------------------------------------------------------------------------
def init_torch_params(key, d, n_bag, h_c, h_k, n_sample):
    keys = iter(jax.random.split(key, 128))

    def nrm(shape, s=0.1):
        return s * jax.random.normal(next(keys), shape, jnp.float32)

    def skip_params(c):
        p = {}
        for name, (o, i) in (("1", (h_c, c)), ("2", (h_c, c)), ("3", (c, c))):
            p[f"w{name}"] = nrm((o, i))
            p[f"b{name}"] = nrm((o,))
            p[f"gamma{name}"] = 1.0 + nrm((o,))
            p[f"beta{name}"] = nrm((o,))
            p[f"mean{name}"] = nrm((o,))
            p[f"var{name}"] = 0.5 + jax.random.uniform(next(keys), (o,), jnp.float32)
        return p

    return {
        "skip1": skip_params(d),
        "skip2": skip_params(d),
        "skip3": skip_params(n_bag),
        "mask": {
            "w1": nrm((h_k, n_bag)), "b1": nrm((h_k,)),
            "w2": nrm((h_k, n_bag)), "b2": nrm((h_k,)),
            "w3": nrm((n_bag, h_k)), "b3": nrm((n_bag,)),
            "w4": nrm((1, h_k)), "b4": nrm((1,)),
        },
        "emb_w": nrm((d, d + n_sample)),
        "emb_b": nrm((d,)),
    }


def fuse_params(tp):
    def fuse_skip(p):
        wc = jnp.concatenate([p["w1"].T, p["w2"].T, p["w3"].T], axis=1)   # [c, 2h_c + c]
        bias = jnp.concatenate([p["b1"], p["b2"], p["b3"]])
        gamma = jnp.concatenate([p["gamma1"], p["gamma2"], p["gamma3"]])
        beta = jnp.concatenate([p["beta1"], p["beta2"], p["beta3"]])
        mean = jnp.concatenate([p["mean1"], p["mean2"], p["mean3"]])
        var = jnp.concatenate([p["var1"], p["var2"], p["var3"]])
        scale = gamma / jnp.sqrt(var + BN_EPS)
        shift = beta - mean * scale
        affine = jnp.stack([bias, scale, shift], axis=0)                  # [3, 2h_c + c]
        return wc, affine

    w1, a1 = fuse_skip(tp["skip1"])
    w2, a2 = fuse_skip(tp["skip2"])
    w3, a3 = fuse_skip(tp["skip3"])
    m = tp["mask"]
    return {
        "w_skip1": w1, "aff_skip1": a1,
        "w_skip2": w2, "aff_skip2": a2,
        "w_skip3": w3, "aff_skip3": a3,
        "w_m12": jnp.concatenate([m["w1"].T, m["w2"].T], axis=1),   # [n_bag, 2*h_k]
        "b_m12": jnp.concatenate([m["b1"], m["b2"]])[None, :],      # [1, 2*h_k]
        "w_m3": m["w3"].T,                                          # [h_k, n_bag]
        "b_m3": m["b3"][None, :],                                   # [1, n_bag]
        "w_m4": m["w4"].T,                                          # [h_k, 1]
        "b_m4": m["b4"].reshape(1, 1),                              # [1, 1]
        "w_emb": tp["emb_w"].T,                                     # [d + n_sample, d]
        "b_emb": tp["emb_b"][None, :],                              # [1, d]
    }


# --------------------------------------------------------------------------
# Pure-JAX reference mirroring the PyTorch forward (eval mode).
# --------------------------------------------------------------------------
def reference_forward(B, knowledge_bag, tp, n_sample):
    lrelu = lambda v: jnp.where(v > 0, v, 0.01 * v)

    def bn(x, p, i):
        return ((x - p[f"mean{i}"]) / jnp.sqrt(p[f"var{i}"] + BN_EPS)
                * p[f"gamma{i}"] + p[f"beta{i}"])

    def skip(x, p):
        x1 = bn(lrelu(x @ p["w1"].T + p["b1"]), p, "1")
        x2 = bn(lrelu(x @ p["w2"].T + p["b2"]), p, "2")
        x3 = bn(lrelu(x @ p["w3"].T + p["b3"]), p, "3")
        feat = jax.nn.softmax(x1 @ x2.T, axis=0)        # torch Softmax(dim=1) on [1,M,M]
        return feat @ x3 + x

    def mask_block(a, p):
        x1 = lrelu(a @ p["w1"].T + p["b1"])
        x2 = jnp.tanh(a @ p["w2"].T + p["b2"])
        mm = x1.T @ x2
        a3 = lrelu(mm @ p["w3"].T + p["b3"]).T          # [n_bag, h_k]
        s = (a3 @ p["w4"].T + p["b4"])[:, 0]            # [n_bag]
        return jax.nn.softmax(s)

    xs = skip(B, tp["skip1"])
    ks = skip(knowledge_bag, tp["skip2"])
    d2 = (jnp.sum(xs * xs, 1, keepdims=True) - 2.0 * xs @ ks.T
          + jnp.sum(ks * ks, 1)[None, :])
    aff = jnp.sqrt(jnp.maximum(d2, 0.0))
    aff_skip = skip(aff, tp["skip3"])
    scores = mask_block(aff_skip, tp["mask"])
    top = jnp.argsort(-scores)[:n_sample]
    b_bag = jax.nn.softmax(aff_skip[:, top], axis=-1)
    fused = jnp.concatenate([B, b_bag], axis=1)
    out = lrelu(fused @ tp["emb_w"].T + tp["emb_b"])
    return out[None]


if __name__ == "__main__":
    # Make the pure-JAX reference matmuls exact f32 so the comparison is meaningful.
    jax.config.update("jax_default_matmul_precision", "highest")

    # args: H_c = 32, H_k = 16, n_mask = 4, r_mask = 0.5 ; d = 32 ; N = 8 ; n_bag = 16
    N, d, n_bag = 8, 32, 16
    H_c, H_k = 32, 16
    n_mask, r_mask = 4, 0.5
    n_sample = max(n_mask, int(r_mask * n_bag))        # 8

    key = jax.random.PRNGKey(0)
    k_b, k_kb, k_p = jax.random.split(key, 3)
    B = jax.random.normal(k_b, (N, d), jnp.float32)
    knowledge_bag = jax.random.normal(k_kb, (n_bag, d), jnp.float32)

    torch_params = init_torch_params(k_p, d, n_bag, H_c, H_k, n_sample)
    kernel_params = fuse_params(torch_params)

    fwd = make_knowledge_fuse_block(d, n_bag, H_c, H_k, n_sample)
    B_fuse = fwd(B, knowledge_bag, kernel_params)
    jax.block_until_ready(B_fuse)

    ref = reference_forward(B, knowledge_bag, torch_params, n_sample)

    assert B_fuse.shape == (1, N, d), B_fuse.shape
    assert bool(jnp.all(jnp.isfinite(B_fuse)))
    err = float(jnp.max(jnp.abs(B_fuse - ref)))
    assert jnp.allclose(B_fuse, ref, atol=1e-4, rtol=1e-4), f"max abs err = {err}"

    print("KERNEL_OK")
</pallas_src>

<mosaic_0001>
module attributes {stable_mosaic.version = 11 : i64} {
  func.func @_stage1_kernel(%arg0: memref<8x32xf32, #tpu.memory_space<vmem>>, %arg1: memref<16x32xf32, #tpu.memory_space<vmem>>, %arg2: memref<32x96xf32, #tpu.memory_space<vmem>>, %arg3: memref<3x96xf32, #tpu.memory_space<vmem>>, %arg4: memref<32x96xf32, #tpu.memory_space<vmem>>, %arg5: memref<3x96xf32, #tpu.memory_space<vmem>>, %arg6: memref<16x80xf32, #tpu.memory_space<vmem>>, %arg7: memref<3x80xf32, #tpu.memory_space<vmem>>, %arg8: memref<16x32xf32, #tpu.memory_space<vmem>>, %arg9: memref<1x32xf32, #tpu.memory_space<vmem>>, %arg10: memref<16x16xf32, #tpu.memory_space<vmem>>, %arg11: memref<1x16xf32, #tpu.memory_space<vmem>>, %arg12: memref<16x1xf32, #tpu.memory_space<vmem>>, %arg13: memref<1x1xf32, #tpu.memory_space<vmem>>, %arg14: memref<8x16xf32, #tpu.memory_space<vmem>>, %arg15: memref<1x16xf32, #tpu.memory_space<vmem>>) attributes {dimension_semantics = [], scalar_prefetch = 0 : i64, scratch_operands = 0 : i64, tpu.core_type = #tpu.core_type<tc>} {
    %c0 = arith.constant 0 : index
    %c0_0 = arith.constant 0 : index
    %0 = vector.load %arg0[%c0, %c0_0] : memref<8x32xf32, #tpu.memory_space<vmem>>, vector<8x32xf32>
    %c0_1 = arith.constant 0 : index
    %c0_2 = arith.constant 0 : index
    %1 = vector.load %arg1[%c0_1, %c0_2] : memref<16x32xf32, #tpu.memory_space<vmem>>, vector<16x32xf32>
    %c0_3 = arith.constant 0 : index
    %c0_4 = arith.constant 0 : index
    %2 = vector.load %arg2[%c0_3, %c0_4] : memref<32x96xf32, #tpu.memory_space<vmem>>, vector<32x96xf32>
    %c0_5 = arith.constant 0 : index
    %c0_6 = arith.constant 0 : index
    %3 = vector.load %arg3[%c0_5, %c0_6] : memref<3x96xf32, #tpu.memory_space<vmem>>, vector<3x96xf32>
    %cst = arith.constant dense<0.000000e+00> : vector<8x96xf32>
    %4 = tpu.matmul %0, %2, %cst {dimension_numbers = #tpu.dot_dimension_numbers<[1], [0], [0], [1], [0, 0, 1, 1], [], []>, precision = #tpu.contract_precision<fp32>} : vector<8x32xf32>, vector<32x96xf32>, vector<8x96xf32> -> vector<8x96xf32>
    %5 = vector.extract_strided_slice %3 {offsets = [0, 0], sizes = [1, 96], strides = [1, 1]} : vector<3x96xf32> to vector<1x96xf32>
    %6 = vector.broadcast %5 : vector<1x96xf32> to vector<8x96xf32>
    %7 = arith.addf %4, %6 : vector<8x96xf32>
    %cst_7 = arith.constant 0.00999999977 : f32
    %8 = vector.broadcast %cst_7 : f32 to vector<8x96xf32>
    %9 = arith.mulf %8, %7 : vector<8x96xf32>
    %10 = arith.maximumf %7, %9 : vector<8x96xf32>
    %11 = vector.extract_strided_slice %3 {offsets = [1, 0], sizes = [1, 96], strides = [1, 1]} : vector<3x96xf32> to vector<1x96xf32>
    %12 = vector.broadcast %11 : vector<1x96xf32> to vector<8x96xf32>
    %13 = arith.mulf %10, %12 : vector<8x96xf32>
    %14 = vector.extract_strided_slice %3 {offsets = [2, 0], sizes = [1, 96], strides = [1, 1]} : vector<3x96xf32> to vector<1x96xf32>
    %15 = vector.broadcast %14 : vector<1x96xf32> to vector<8x96xf32>
    %16 = arith.addf %13, %15 : vector<8x96xf32>
    %17 = vector.extract_strided_slice %16 {offsets = [0, 0], sizes = [8, 32], strides = [1, 1]} : vector<8x96xf32> to vector<8x32xf32>
    %18 = vector.extract_strided_slice %16 {offsets = [0, 32], sizes = [8, 32], strides = [1, 1]} : vector<8x96xf32> to vector<8x32xf32>
    %19 = vector.extract_strided_slice %16 {offsets = [0, 64], sizes = [8, 32], strides = [1, 1]} : vector<8x96xf32> to vector<8x32xf32>
    %cst_8 = arith.constant dense<0.000000e+00> : vector<8x8xf32>
    %20 = tpu.matmul %17, %18, %cst_8 {dimension_numbers = #tpu.dot_dimension_numbers<[1], [1], [0], [0], [0, 0, 1, 0], [], []>, precision = #tpu.contract_precision<fp32>} : vector<8x32xf32>, vector<8x32xf32>, vector<8x8xf32> -> vector<8x8xf32>
    %cst_9 = arith.constant dense<0xFF800000> : vector<8xf32>
    %21 = vector.multi_reduction <maximumf>, %20, %cst_9 [0] : vector<8x8xf32> to vector<8xf32>
    %22 = vector.shape_cast %21 : vector<8xf32> to vector<1x8xf32>
    %23 = vector.broadcast %22 : vector<1x8xf32> to vector<8x8xf32>
    %24 = arith.subf %20, %23 : vector<8x8xf32>
    %25 = math.exp %24 : vector<8x8xf32>
    %cst_10 = arith.constant dense<0.000000e+00> : vector<8xf32>
    %26 = vector.multi_reduction <add>, %25, %cst_10 [0] : vector<8x8xf32> to vector<8xf32>
    %27 = vector.shape_cast %26 : vector<8xf32> to vector<1x8xf32>
    %28 = vector.broadcast %27 : vector<1x8xf32> to vector<8x8xf32>
    %29 = arith.divf %25, %28 : vector<8x8xf32>
    %cst_11 = arith.constant dense<0.000000e+00> : vector<8x32xf32>
    %30 = tpu.matmul %29, %19, %cst_11 {dimension_numbers = #tpu.dot_dimension_numbers<[1], [0], [0], [1], [0, 0, 1, 1], [], []>, precision = #tpu.contract_precision<fp32>} : vector<8x8xf32>, vector<8x32xf32>, vector<8x32xf32> -> vector<8x32xf32>
    %31 = arith.addf %30, %0 : vector<8x32xf32>
    %c0_12 = arith.constant 0 : index
    %c0_13 = arith.constant 0 : index
    %32 = vector.load %arg4[%c0_12, %c0_13] : memref<32x96xf32, #tpu.memory_space<vmem>>, vector<32x96xf32>
    %c0_14 = arith.constant 0 : index
    %c0_15 = arith.constant 0 : index
    %33 = vector.load %arg5[%c0_14, %c0_15] : memref<3x96xf32, #tpu.memory_space<vmem>>, vector<3x96xf32>
    %cst_16 = arith.constant dense<0.000000e+00> : vector<16x96xf32>
    %34 = tpu.matmul %1, %32, %cst_16 {dimension_numbers = #tpu.dot_dimension_numbers<[1], [0], [0], [1], [0, 0, 1, 1], [], []>, precision = #tpu.contract_precision<fp32>} : vector<16x32xf32>, vector<32x96xf32>, vector<16x96xf32> -> vector<16x96xf32>
    %35 = vector.extract_strided_slice %33 {offsets = [0, 0], sizes = [1, 96], strides = [1, 1]} : vector<3x96xf32> to vector<1x96xf32>
    %36 = vector.broadcast %35 : vector<1x96xf32> to vector<16x96xf32>
    %37 = arith.addf %34, %36 : vector<16x96xf32>
    %cst_17 = arith.constant 0.00999999977 : f32
    %38 = vector.broadcast %cst_17 : f32 to vector<16x96xf32>
    %39 = arith.mulf %38, %37 : vector<16x96xf32>
    %40 = arith.maximumf %37, %39 : vector<16x96xf32>
    %41 = vector.extract_strided_slice %33 {offsets = [1, 0], sizes = [1, 96], strides = [1, 1]} : vector<3x96xf32> to vector<1x96xf32>
    %42 = vector.broadcast %41 : vector<1x96xf32> to vector<16x96xf32>
    %43 = arith.mulf %40, %42 : vector<16x96xf32>
    %44 = vector.extract_strided_slice %33 {offsets = [2, 0], sizes = [1, 96], strides = [1, 1]} : vector<3x96xf32> to vector<1x96xf32>
    %45 = vector.broadcast %44 : vector<1x96xf32> to vector<16x96xf32>
    %46 = arith.addf %43, %45 : vector<16x96xf32>
    %47 = vector.extract_strided_slice %46 {offsets = [0, 0], sizes = [16, 32], strides = [1, 1]} : vector<16x96xf32> to vector<16x32xf32>
    %48 = vector.extract_strided_slice %46 {offsets = [0, 32], sizes = [16, 32], strides = [1, 1]} : vector<16x96xf32> to vector<16x32xf32>
    %49 = vector.extract_strided_slice %46 {offsets = [0, 64], sizes = [16, 32], strides = [1, 1]} : vector<16x96xf32> to vector<16x32xf32>
    %cst_18 = arith.constant dense<0.000000e+00> : vector<16x16xf32>
    %50 = tpu.matmul %47, %48, %cst_18 {dimension_numbers = #tpu.dot_dimension_numbers<[1], [1], [0], [0], [0, 0, 1, 0], [], []>, precision = #tpu.contract_precision<fp32>} : vector<16x32xf32>, vector<16x32xf32>, vector<16x16xf32> -> vector<16x16xf32>
    %cst_19 = arith.constant dense<0xFF800000> : vector<16xf32>
    %51 = vector.multi_reduction <maximumf>, %50, %cst_19 [0] : vector<16x16xf32> to vector<16xf32>
    %52 = vector.shape_cast %51 : vector<16xf32> to vector<1x16xf32>
    %53 = vector.broadcast %52 : vector<1x16xf32> to vector<16x16xf32>
    %54 = arith.subf %50, %53 : vector<16x16xf32>
    %55 = math.exp %54 : vector<16x16xf32>
    %cst_20 = arith.constant dense<0.000000e+00> : vector<16xf32>
    %56 = vector.multi_reduction <add>, %55, %cst_20 [0] : vector<16x16xf32> to vector<16xf32>
    %57 = vector.shape_cast %56 : vector<16xf32> to vector<1x16xf32>
    %58 = vector.broadcast %57 : vector<1x16xf32> to vector<16x16xf32>
    %59 = arith.divf %55, %58 : vector<16x16xf32>
    %cst_21 = arith.constant dense<0.000000e+00> : vector<16x32xf32>
    %60 = tpu.matmul %59, %49, %cst_21 {dimension_numbers = #tpu.dot_dimension_numbers<[1], [0], [0], [1], [0, 0, 1, 1], [], []>, precision = #tpu.contract_precision<fp32>} : vector<16x16xf32>, vector<16x32xf32>, vector<16x32xf32> -> vector<16x32xf32>
    %61 = arith.addf %60, %1 : vector<16x32xf32>
    %cst_22 = arith.constant dense<0.000000e+00> : vector<8x16xf32>
    %62 = tpu.matmul %31, %61, %cst_22 {dimension_numbers = #tpu.dot_dimension_numbers<[1], [1], [0], [0], [0, 0, 1, 0], [], []>, precision = #tpu.contract_precision<fp32>} : vector<8x32xf32>, vector<16x32xf32>, vector<8x16xf32> -> vector<8x16xf32>
    %63 = arith.mulf %31, %31 : vector<8x32xf32>
    %cst_23 = arith.constant dense<0.000000e+00> : vector<8xf32>
    %64 = vector.multi_reduction <add>, %63, %cst_23 [1] : vector<8x32xf32> to vector<8xf32>
    %65 = vector.shape_cast %64 : vector<8xf32> to vector<8x1xf32>
    %66 = arith.mulf %61, %61 : vector<16x32xf32>
    %cst_24 = arith.constant dense<0.000000e+00> : vector<16xf32>
    %67 = vector.multi_reduction <add>, %66, %cst_24 [1] : vector<16x32xf32> to vector<16xf32>
    %68 = vector.shape_cast %67 : vector<16xf32> to vector<16x1xf32>
    %cst_25 = arith.constant 2.000000e+00 : f32
    %69 = vector.broadcast %cst_25 : f32 to vector<8x16xf32>
    %70 = arith.mulf %69, %62 : vector<8x16xf32>
    %71 = vector.broadcast %65 : vector<8x1xf32> to vector<8x16xf32>
    %72 = arith.subf %71, %70 : vector<8x16xf32>
    %73 = tpu.transpose %68, [1, 0] : vector<16x1xf32> -> vector<1x16xf32>
    %74 = vector.broadcast %73 : vector<1x16xf32> to vector<8x16xf32>
    %75 = arith.addf %72, %74 : vector<8x16xf32>
    %cst_26 = arith.constant 0.000000e+00 : f32
    %76 = vector.broadcast %cst_26 : f32 to vector<8x16xf32>
    %77 = arith.maximumf %75, %76 : vector<8x16xf32>
    %78 = math.sqrt %77 : vector<8x16xf32>
    %c0_27 = arith.constant 0 : index
    %c0_28 = arith.constant 0 : index
    %79 = vector.load %arg6[%c0_27, %c0_28] : memref<16x80xf32, #tpu.memory_space<vmem>>, vector<16x80xf32>
    %c0_29 = arith.constant 0 : index
    %c0_30 = arith.constant 0 : index
    %80 = vector.load %arg7[%c0_29, %c0_30] : memref<3x80xf32, #tpu.memory_space<vmem>>, vector<3x80xf32>
    %cst_31 = arith.constant dense<0.000000e+00> : vector<8x80xf32>
    %81 = tpu.matmul %78, %79, %cst_31 {dimension_numbers = #tpu.dot_dimension_numbers<[1], [0], [0], [1], [0, 0, 1, 1], [], []>, precision = #tpu.contract_precision<fp32>} : vector<8x16xf32>, vector<16x80xf32>, vector<8x80xf32> -> vector<8x80xf32>
    %82 = vector.extract_strided_slice %80 {offsets = [0, 0], sizes = [1, 80], strides = [1, 1]} : vector<3x80xf32> to vector<1x80xf32>
    %83 = vector.broadcast %82 : vector<1x80xf32> to vector<8x80xf32>
    %84 = arith.addf %81, %83 : vector<8x80xf32>
    %cst_32 = arith.constant 0.00999999977 : f32
    %85 = vector.broadcast %cst_32 : f32 to vector<8x80xf32>
    %86 = arith.mulf %85, %84 : vector<8x80xf32>
    %87 = arith.maximumf %84, %86 : vector<8x80xf32>
    %88 = vector.extract_strided_slice %80 {offsets = [1, 0], sizes = [1, 80], strides = [1, 1]} : vector<3x80xf32> to vector<1x80xf32>
    %89 = vector.broadcast %88 : vector<1x80xf32> to vector<8x80xf32>
    %90 = arith.mulf %87, %89 : vector<8x80xf32>
    %91 = vector.extract_strided_slice %80 {offsets = [2, 0], sizes = [1, 80], strides = [1, 1]} : vector<3x80xf32> to vector<1x80xf32>
    %92 = vector.broadcast %91 : vector<1x80xf32> to vector<8x80xf32>
    %93 = arith.addf %90, %92 : vector<8x80xf32>
    %94 = vector.extract_strided_slice %93 {offsets = [0, 0], sizes = [8, 32], strides = [1, 1]} : vector<8x80xf32> to vector<8x32xf32>
    %95 = vector.extract_strided_slice %93 {offsets = [0, 32], sizes = [8, 32], strides = [1, 1]} : vector<8x80xf32> to vector<8x32xf32>
    %96 = vector.extract_strided_slice %93 {offsets = [0, 64], sizes = [8, 16], strides = [1, 1]} : vector<8x80xf32> to vector<8x16xf32>
    %cst_33 = arith.constant dense<0.000000e+00> : vector<8x8xf32>
    %97 = tpu.matmul %94, %95, %cst_33 {dimension_numbers = #tpu.dot_dimension_numbers<[1], [1], [0], [0], [0, 0, 1, 0], [], []>, precision = #tpu.contract_precision<fp32>} : vector<8x32xf32>, vector<8x32xf32>, vector<8x8xf32> -> vector<8x8xf32>
    %cst_34 = arith.constant dense<0xFF800000> : vector<8xf32>
    %98 = vector.multi_reduction <maximumf>, %97, %cst_34 [0] : vector<8x8xf32> to vector<8xf32>
    %99 = vector.shape_cast %98 : vector<8xf32> to vector<1x8xf32>
    %100 = vector.broadcast %99 : vector<1x8xf32> to vector<8x8xf32>
    %101 = arith.subf %97, %100 : vector<8x8xf32>
    %102 = math.exp %101 : vector<8x8xf32>
    %cst_35 = arith.constant dense<0.000000e+00> : vector<8xf32>
    %103 = vector.multi_reduction <add>, %102, %cst_35 [0] : vector<8x8xf32> to vector<8xf32>
    %104 = vector.shape_cast %103 : vector<8xf32> to vector<1x8xf32>
    %105 = vector.broadcast %104 : vector<1x8xf32> to vector<8x8xf32>
    %106 = arith.divf %102, %105 : vector<8x8xf32>
    %cst_36 = arith.constant dense<0.000000e+00> : vector<8x16xf32>
    %107 = tpu.matmul %106, %96, %cst_36 {dimension_numbers = #tpu.dot_dimension_numbers<[1], [0], [0], [1], [0, 0, 1, 1], [], []>, precision = #tpu.contract_precision<fp32>} : vector<8x8xf32>, vector<8x16xf32>, vector<8x16xf32> -> vector<8x16xf32>
    %108 = arith.addf %107, %78 : vector<8x16xf32>
    %c0_37 = arith.constant 0 : index
    %c0_38 = arith.constant 0 : index
    %109 = vector.load %arg14[%c0_37, %c0_38] : memref<8x16xf32, #tpu.memory_space<vmem>>, vector<8x16xf32>
    tpu.vector_store %arg14[%c0_37, %c0_38], %108 {strides = array<i32>} : memref<8x16xf32, #tpu.memory_space<vmem>>, vector<8x16xf32>,
    %c0_39 = arith.constant 0 : index
    %c0_40 = arith.constant 0 : index
    %110 = vector.load %arg8[%c0_39, %c0_40] : memref<16x32xf32, #tpu.memory_space<vmem>>, vector<16x32xf32>
    %cst_41 = arith.constant dense<0.000000e+00> : vector<8x32xf32>
    %111 = tpu.matmul %108, %110, %cst_41 {dimension_numbers = #tpu.dot_dimension_numbers<[1], [0], [0], [1], [0, 0, 1, 1], [], []>, precision = #tpu.contract_precision<fp32>} : vector<8x16xf32>, vector<16x32xf32>, vector<8x32xf32> -> vector<8x32xf32>
    %c0_42 = arith.constant 0 : index
    %c0_43 = arith.constant 0 : index
    %112 = vector.load %arg9[%c0_42, %c0_43] : memref<1x32xf32, #tpu.memory_space<vmem>>, vector<1x32xf32>
    %113 = vector.broadcast %112 : vector<1x32xf32> to vector<8x32xf32>
    %114 = arith.addf %111, %113 : vector<8x32xf32>
    %115 = vector.extract_strided_slice %114 {offsets = [0, 0], sizes = [8, 16], strides = [1, 1]} : vector<8x32xf32> to vector<8x16xf32>
    %cst_44 = arith.constant 0.00999999977 : f32
    %116 = vector.broadcast %cst_44 : f32 to vector<8x16xf32>
    %117 = arith.mulf %116, %115 : vector<8x16xf32>
    %118 = arith.maximumf %115, %117 : vector<8x16xf32>
    %119 = vector.extract_strided_slice %114 {offsets = [0, 16], sizes = [8, 16], strides = [1, 1]} : vector<8x32xf32> to vector<8x16xf32>
    %120 = math.tanh %119 : vector<8x16xf32>
    %121 = tpu.transpose %118, [1, 0] : vector<8x16xf32> -> vector<16x8xf32>
    %cst_45 = arith.constant dense<0.000000e+00> : vector<16x16xf32>
    %122 = tpu.matmul %121, %120, %cst_45 {dimension_numbers = #tpu.dot_dimension_numbers<[1], [0], [0], [1], [0, 0, 1, 1], [], []>, precision = #tpu.contract_precision<fp32>} : vector<16x8xf32>, vector<8x16xf32>, vector<16x16xf32> -> vector<16x16xf32>
    %c0_46 = arith.constant 0 : index
    %c0_47 = arith.constant 0 : index
    %123 = vector.load %arg10[%c0_46, %c0_47] : memref<16x16xf32, #tpu.memory_space<vmem>>, vector<16x16xf32>
    %cst_48 = arith.constant dense<0.000000e+00> : vector<16x16xf32>
    %124 = tpu.matmul %122, %123, %cst_48 {dimension_numbers = #tpu.dot_dimension_numbers<[1], [0], [0], [1], [0, 0, 1, 1], [], []>, precision = #tpu.contract_precision<fp32>} : vector<16x16xf32>, vector<16x16xf32>, vector<16x16xf32> -> vector<16x16xf32>
    %c0_49 = arith.constant 0 : index
    %c0_50 = arith.constant 0 : index
    %125 = vector.load %arg11[%c0_49, %c0_50] : memref<1x16xf32, #tpu.memory_space<vmem>>, vector<1x16xf32>
    %126 = vector.broadcast %125 : vector<1x16xf32> to vector<16x16xf32>
    %127 = arith.addf %124, %126 : vector<16x16xf32>
    %cst_51 = arith.constant 0.00999999977 : f32
    %128 = vector.broadcast %cst_51 : f32 to vector<16x16xf32>
    %129 = arith.mulf %128, %127 : vector<16x16xf32>
    %130 = arith.maximumf %127, %129 : vector<16x16xf32>
    %c0_52 = arith.constant 0 : index
    %c0_53 = arith.constant 0 : index
    %131 = vector.load %arg12[%c0_52, %c0_53] : memref<16x1xf32, #tpu.memory_space<vmem>>, vector<16x1xf32>
    %132 = vector.broadcast %131 : vector<16x1xf32> to vector<16x16xf32>
    %133 = arith.mulf %130, %132 : vector<16x16xf32>
    %cst_54 = arith.constant dense<0.000000e+00> : vector<16xf32>
    %134 = vector.multi_reduction <add>, %133, %cst_54 [0] : vector<16x16xf32> to vector<16xf32>
    %135 = vector.shape_cast %134 : vector<16xf32> to vector<1x16xf32>
    %c0_55 = arith.constant 0 : index
    %c0_56 = arith.constant 0 : index
    %136 = vector.load %arg13[%c0_55, %c0_56] : memref<1x1xf32, #tpu.memory_space<vmem>>, vector<1x1xf32>
    %137 = vector.broadcast %136 : vector<1x1xf32> to vector<1x16xf32>
    %138 = arith.addf %135, %137 : vector<1x16xf32>
    %cst_57 = arith.constant dense<0xFF800000> : vector<1xf32>
    %139 = vector.multi_reduction <maximumf>, %138, %cst_57 [1] : vector<1x16xf32> to vector<1xf32>
    %140 = vector.shape_cast %139 : vector<1xf32> to vector<1x1xf32>
    %141 = vector.broadcast %140 : vector<1x1xf32> to vector<1x16xf32>
    %142 = arith.subf %138, %141 : vector<1x16xf32>
    %143 = math.exp %142 : vector<1x16xf32>
    %cst_58 = arith.constant dense<0.000000e+00> : vector<1xf32>
    %144 = vector.multi_reduction <add>, %143, %cst_58 [1] : vector<1x16xf32> to vector<1xf32>
    %145 = vector.shape_cast %144 : vector<1xf32> to vector<1x1xf32>
    %146 = vector.broadcast %145 : vector<1x1xf32> to vector<1x16xf32>
    %147 = arith.divf %143, %146 : vector<1x16xf32>
    %c0_59 = arith.constant 0 : index
    %c0_60 = arith.constant 0 : index
    %148 = vector.load %arg15[%c0_59, %c0_60] : memref<1x16xf32, #tpu.memory_space<vmem>>, vector<1x16xf32>
    tpu.vector_store %arg15[%c0_59, %c0_60], %147 {strides = array<i32>} : memref<1x16xf32, #tpu.memory_space<vmem>>, vector<1x16xf32>,
    return
  }
}

module attributes {stable_mosaic.version = 11 : i64} {
  func.func @_stage2_kernel(%arg0: memref<8x16xf32, #tpu.memory_space<vmem>>, %arg1: memref<1x8xi32, #tpu.memory_space<vmem>>, %arg2: memref<8x32xf32, #tpu.memory_space<vmem>>, %arg3: memref<40x32xf32, #tpu.memory_space<vmem>>, %arg4: memref<1x32xf32, #tpu.memory_space<vmem>>, %arg5: memref<8x32xf32, #tpu.memory_space<vmem>>) attributes {dimension_semantics = [], scalar_prefetch = 0 : i64, scratch_operands = 0 : i64, tpu.core_type = #tpu.core_type<tc>} {
    %0 = tpu.iota {dimensions = array<i32: 0>} : vector<16x8xi32>
    %c0 = arith.constant 0 : index
    %c0_0 = arith.constant 0 : index
    %1 = vector.load %arg1[%c0, %c0_0] : memref<1x8xi32, #tpu.memory_space<vmem>>, vector<1x8xi32>
    %2 = vector.broadcast %1 : vector<1x8xi32> to vector<16x8xi32>
    %3 = arith.cmpi eq, %0, %2 : vector<16x8xi32>
    %cst = arith.constant 1.000000e+00 : f32
    %cst_1 = arith.constant 0.000000e+00 : f32
    %4 = vector.broadcast %cst : f32 to vector<16x8xf32>
    %5 = vector.broadcast %cst_1 : f32 to vector<16x8xf32>
    %6 = arith.select %3, %4, %5 : vector<16x8xi1>, vector<16x8xf32>
    %c0_2 = arith.constant 0 : index
    %c0_3 = arith.constant 0 : index
    %7 = vector.load %arg0[%c0_2, %c0_3] : memref<8x16xf32, #tpu.memory_space<vmem>>, vector<8x16xf32>
    %cst_4 = arith.constant dense<0.000000e+00> : vector<8x8xf32>
    %8 = tpu.matmul %7, %6, %cst_4 {dimension_numbers = #tpu.dot_dimension_numbers<[1], [0], [0], [1], [0, 0, 1, 1], [], []>, precision = #tpu.contract_precision<fp32>} : vector<8x16xf32>, vector<16x8xf32>, vector<8x8xf32> -> vector<8x8xf32>
    %cst_5 = arith.constant dense<0xFF800000> : vector<8xf32>
    %9 = vector.multi_reduction <maximumf>, %8, %cst_5 [1] : vector<8x8xf32> to vector<8xf32>
    %10 = vector.shape_cast %9 : vector<8xf32> to vector<8x1xf32>
    %11 = vector.broadcast %10 : vector<8x1xf32> to vector<8x8xf32>
    %12 = arith.subf %8, %11 : vector<8x8xf32>
    %13 = math.exp %12 : vector<8x8xf32>
    %cst_6 = arith.constant dense<0.000000e+00> : vector<8xf32>
    %14 = vector.multi_reduction <add>, %13, %cst_6 [1] : vector<8x8xf32> to vector<8xf32>
    %15 = vector.shape_cast %14 : vector<8xf32> to vector<8x1xf32>
    %16 = vector.broadcast %15 : vector<8x1xf32> to vector<8x8xf32>
    %17 = arith.divf %13, %16 : vector<8x8xf32>
    %c0_7 = arith.constant 0 : index
    %c0_8 = arith.constant 0 : index
    %18 = vector.load %arg2[%c0_7, %c0_8] : memref<8x32xf32, #tpu.memory_space<vmem>>, vector<8x32xf32>
    %19 = tpu.concatenate %18, %17 in 1 : vector<8x32xf32>, vector<8x8xf32> -> vector<8x40xf32>
    %c0_9 = arith.constant 0 : index
    %c0_10 = arith.constant 0 : index
    %20 = vector.load %arg3[%c0_9, %c0_10] : memref<40x32xf32, #tpu.memory_space<vmem>>, vector<40x32xf32>
    %cst_11 = arith.constant dense<0.000000e+00> : vector<8x32xf32>
    %21 = tpu.matmul %19, %20, %cst_11 {dimension_numbers = #tpu.dot_dimension_numbers<[1], [0], [0], [1], [0, 0, 1, 1], [], []>, precision = #tpu.contract_precision<fp32>} : vector<8x40xf32>, vector<40x32xf32>, vector<8x32xf32> -> vector<8x32xf32>
    %c0_12 = arith.constant 0 : index
    %c0_13 = arith.constant 0 : index
    %22 = vector.load %arg4[%c0_12, %c0_13] : memref<1x32xf32, #tpu.memory_space<vmem>>, vector<1x32xf32>
    %23 = vector.broadcast %22 : vector<1x32xf32> to vector<8x32xf32>
    %24 = arith.addf %21, %23 : vector<8x32xf32>
    %cst_14 = arith.constant 0.00999999977 : f32
    %25 = vector.broadcast %cst_14 : f32 to vector<8x32xf32>
    %26 = arith.mulf %25, %24 : vector<8x32xf32>
    %27 = arith.maximumf %24, %26 : vector<8x32xf32>
    %c0_15 = arith.constant 0 : index
    %c0_16 = arith.constant 0 : index
    %28 = vector.load %arg5[%c0_15, %c0_16] : memref<8x32xf32, #tpu.memory_space<vmem>>, vector<8x32xf32>
    tpu.vector_store %arg5[%c0_15, %c0_16], %27 {strides = array<i32>} : memref<8x32xf32, #tpu.memory_space<vmem>>, vector<8x32xf32>,
    return
  }
}

</mosaic_0001>

<bundles_post_ra>
// kernel: forward.3
= control target key start
LH: loop header
LB: loop body
LE: loop exit
PB: predicated region body
PF: predicated region fallthrough
CT: control target
= control target key end

     0   :  { %v21_v0 = vlaneseq  ;;  %v1325_v2 = vmov 0.0|0.0   ;;  %vm34_vm0 = vcmask 130048   ;;  %s1493_s0 = inlined_call_operand.vmem [shape: f32[8,16], index: 0, kind: input, shape index: {}]   ;;  %s1494_s1 = inlined_call_operand.vmem [shape: s32[1,8], index: 1, kind: input, shape index: {}]   ;;  %s1495_s2 = inlined_call_operand.vmem [shape: f32[8,32], index: 2, kind: input, shape index: {}]   ;;  %s1496_s3 = inlined_call_operand.vmem [shape: f32[40,32], index: 3, kind: input, shape index: {}]   ;;  %s1497_s4 = inlined_call_operand.vmem [shape: f32[1,32], index: 4, kind: input, shape index: {}]   ;;  %s1498_s5 = inlined_call_operand.hbm [shape: f32[8,32], index: 5, kind: output, shape index: {}]  }
   0x1   :  { %v1035_v1 = vld [vmem:[%s1494_s1] ss:$0 sm:$0xff]  ;;  %1217 = vmatprep.subr.bf16.mxu0 %v1325_v2  ;;  %1247 = vmatprep.subr.bf16.mxu1 %v1325_v2 }
   0x2   :  { %v33_v3 = vld [vmem:[%s1493_s0] sm:$0xff] }
   0x3   :  { %10 = vsyncpa [#allocation3], 0  ;;  %v22_v4 = vshrl.u32 %v21_v0, 7  ;;  %vm1326_vm1 = vmmov 0   ;;  %v1327_v5 = vmov 0.0   ;;  %v36_v6 = vsel %vm34_vm0, %v33_v3, 0 }
   0x4   :  { %1101 = vmatprep.mubr.msk.f32.mxu0 %vm1326_vm1, %v1327_v5  ;;  %1175 = vmatprep.mubr.msk.f32.mxu1 %vm1326_vm1, %v1327_v5  ;;  %v103_v7 = vand.u32 4294901760, %v36_v6  ;;  %v1328_v15 = vmov 1.0|1.0   ;;  %vm485_vm5 = vcmask 64512   ;;  %v504_v36 = vld [vmem:[%s1496_s3] sm:$0xff]  ;;  %v505_v37 = vld [vmem:[%s1496_s3 + $0x8] sm:$0xff] }
   0x5   :  { %v23_v8 = vadd.s32 8, %v22_v4  ;;  %vm29_vm2 = vcmp.eq.s32.totalorder %v22_v4, %v1035_v1  ;;  %v521_v38 = vand.u32 4294901760, %v504_v36  ;;  %v524_v39 = vand.u32 4294901760, %v505_v37  ;;  %v506_v43 = vld [vmem:[%s1496_s3 + $0x10] sm:$0xff]  ;;  %v507_v44 = vld [vmem:[%s1496_s3 + $0x18] sm:$0xff]  ;;  %v508_v51 = vld [vmem:[%s1496_s3 + $0x20] sm:$0xff] }
   0x6   :  { %v31_v9 = vsel %vm29_vm2, 1.0, %v1327_v5  ;;  %v104_v10 = vsub.f32 %v36_v6, %v103_v7  ;;  %v527_v45 = vand.u32 4294901760, %v506_v43  ;;  %v530_v46 = vand.u32 4294901760, %v507_v44  ;;  %s1329_s3 = smov 32   ;;  %v497_v6 = vld [vmem:[%s1495_s2] sm:$0xff]  ;;  %s1330_s8 = smov [#allocation2]  }
   0x7   :  { %vm30_vm3 = vcmp.eq.s32.totalorder %v23_v8, %v1035_v1  ;;  %v114_v11 = vsub.f32 %v31_v9, %v31_v9  ;;  %v1409_v40 = vsub.f32 %v504_v36, %v521_v38  ;;  %v1411_v41 = vsub.f32 %v505_v37, %v524_v39  ;;  %s1027_s9 = sshll.u32 %s1330_s8, 4  ;;  %s1028_s9 = int_to_ptr.vmem [resolvable:$true] %s1027_s9 }
   0x8   :  { %v32_v12 = vsel %vm30_vm3, 1.0, %v1327_v5  ;;  %vm1375_vm4 = vmpackc.low %vm30_vm3, %vm29_vm2  ;;  %v105_v14 = vand.u32 4294901760, %v104_v10  ;;  %v616_v47 = vsub.f32 %v506_v43, %v527_v45  ;;  %v623_v48 = vsub.f32 %v507_v44, %v530_v46  ;;  %s1301_s10 = scalar_lea.vmem %s1028_s9, 128  ;;  %p1306_p1 = scmp.lt.s32.totalorder %s1028_s9, %s1028_s9 }
   0x9   :  { %1219 = vmatpush3.bf16.msk.msra.mxu0 %vm1375_vm4, %v1328_v15  ;;  %v115_v16 = vand.u32 4294901760, %v114_v11  ;;  %v120_v17 = vsub.f32 %v32_v12, %v32_v12  ;;  %v1248_v42 = vpack.c.bf16 %v1411_v41, %v1409_v40  ;;  %v1425_v52 = vpack.c.bf16 %v524_v39, %v521_v38  ;;  %p1302_p0 = scmp.ne.s32.totalorder %s1028_s9, %s1301_s10  ;;  %p1307_p2 = scmp.lt.s32.totalorder %s1301_s10, %s1301_s10 }
   0xa   :  { %v106_v18 = vsub.f32 %v104_v10, %v105_v14  ;;  %1220 = vmatprep.subr.bf16.mxu0 %v1325_v2  ;;  %v1251_v49 = vpack.c.bf16 %v623_v48, %v616_v47  ;;  %v1427_v53 = vand.u32 4294901760, %v508_v51  ;;  %v1436_v55 = vpack.c.bf16 %v530_v46, %v527_v45 }
   0xb   :  { %v116_v19 = vsub.f32 %v114_v11, %v115_v16  ;;  %v121_v20 = vand.u32 4294901760, %v120_v17  ;;  %v1224_v26 = vpack.c.bf16 %v120_v17, %v114_v11  ;;  %1249 = vmatpush3.bf16.msra.mxu1 %v1248_v42  ;;  %v617_v56 = vand.u32 4294901760, %v616_v47  ;;  %p1308_p3 = por %p1307_p2, %p1306_p1 }
   0xc   :  { %v107_v21 = vand.u32 4294901760, %v106_v18  ;;  %1250 = vmatprep.subr.bf16.mxu1 %v1325_v2  ;;  %v1432_v54 = vsub.f32 %v508_v51, %v1427_v53  ;;  %v624_v57 = vand.u32 4294901760, %v623_v48  ;;  %v603_v3 = vand.u32 4294901760, %v1409_v40 }
   0xd   :  { %v117_v22 = vand.u32 4294901760, %v116_v19  ;;  %v122_v23 = vsub.f32 %v120_v17, %v121_v20  ;;  %v1230_v27 = vpack.c.bf16 %v121_v20, %v115_v16  ;;  %v618_v60 = vsub.f32 %v616_v47, %v617_v56  ;;  %p1309_p4 = pnand %p1308_p3, %p1302_p0 }
   0xe   :  { %1102 = vmatmul.mubr.f32.vlgmr.msra.gmra.mrb[0].mxu0 %v107_v21  ;;  %v625_v61 = vsub.f32 %v623_v48, %v624_v57  ;;  %v1263_v1 = vpack.c.bf16 %v624_v57, %v617_v56  ;;  %v610_v4 = vand.u32 4294901760, %v1411_v41  ;;  %vm502_vm6 = vcmask 261120  }
   0xf   :  { %v123_v24 = vand.u32 4294901760, %v122_v23  ;;  %1108 = vmatprep.mubr.msk.f32.mxu0 %vm1326_vm1, %v1327_v5  ;;  %1252 = vmatpush3.bf16.msra.mxu1 %v1251_v49  ;;  %v619_v62 = vand.u32 4294901760, %v618_v60  ;;  %vm516_vm7 = vcmask 326656   ;;  %v631_v18 = vand.u32 4294901760, %v1432_v54 }
  0x10   :  { %1173 = vmatprep.subr.mxu1 %v1327_v5  ;;  %v626_v63 = vand.u32 4294901760, %v625_v61  ;;  %v611_v11 = vsub.f32 %v1411_v41, %v610_v4  ;;  %v1260_v21 = vpack.c.bf16 %v610_v4, %v603_v3 }
  0x11   :  { %v1221_v25 = vpack.c.bf16 %v123_v24, %v117_v22  ;;  %v632_v22 = vsub.f32 %v1432_v54, %v631_v18 }
  0x12   :  { %v1245_v0 = vpack.c.bf16 %v626_v63, %v619_v62 }
  0x13   :  { %1222 = vmatpush3.bf16.msra.mxu0 %v1221_v25  ;;  %1174 = vmatpush3.msra.mxu1 %v1432_v54  ;;  %v633_v23 = vand.u32 4294901760, %v632_v22 }
  0x14   :  { %1223 = vmatprep.subr.bf16.mxu0 %v1325_v2  ;;  %1253 = vmatprep.subr.bf16.mxu1 %v1325_v2 }
  0x16   :  { %1109 = vmatmul.mubr.f32.vlgmr.msra.gmra.mrb[0].mxu0 %v103_v7 }
  0x17   :  { %1225 = vmatpush3.bf16.msra.mxu0 %v1224_v26  ;;  %1115 = vmatprep.mubr.msk.f32.mxu0 %vm1326_vm1, %v1327_v5  ;;  %v1042_v26 = vld [vmem:[%s1497_s4] ss:$0 sm:$0xff] }
  0x18   :  { %1226 = vmatprep.subr.bf16.mxu0 %v1325_v2 }
  0x1e   :  { %1116 = vmatmul.mubr.f32.vlgmr.msra.gmra.mrb[0].mxu0 %v104_v10  ;;  %v604_v10 = vsub.f32 %v1409_v40, %v603_v3 }
  0x1f   :  { %1228 = vmatpush3.bf16.msk.msra.mxu0 %vm1375_vm4, %v1328_v15  ;;  %1122 = vmatprep.mubr.msk.f32.mxu0 %vm1326_vm1, %v1327_v5 }
  0x20   :  { %1229 = vmatprep.subr.bf16.mxu0 %v1325_v2 }
  0x26   :  { %1123 = vmatmul.mubr.f32.vlgmr.msra.gmra.mrb[0].mxu0 %v105_v14  ;;  %v605_v14 = vand.u32 4294901760, %v604_v10 }
  0x27   :  { %1231 = vmatpush3.bf16.msra.mxu0 %v1230_v27  ;;  %1129 = vmatprep.mubr.msk.f32.mxu0 %vm1326_vm1, %v1327_v5 }
  0x28   :  { %1232 = vmatprep.subr.bf16.mxu0 %v1325_v2 }
  0x2e   :  { %1130 = vmatmul.mubr.f32.vlgmr.msra.gmra.mrb[0].mxu0 %v103_v7 }
  0x2f   :  { %1234 = vmatpush3.bf16.msk.msra.mxu0 %vm1375_vm4, %v1328_v15  ;;  %1136 = vmatprep.mubr.msk.f32.mxu0 %vm1326_vm1, %v1327_v5  ;;  %v612_v15 = vand.u32 4294901760, %v611_v11 }
  0x30   :  { %1235 = vmatprep.subr.bf16.mxu0 %v1325_v2 }
  0x31   :  { %v1242_v19 = vpack.c.bf16 %v612_v15, %v605_v14 }
  0x36   :  { %1137 = vmatmul.mubr.f32.vlgmr.msra.gmra.mrb[0].mxu0 %v103_v7 }
  0x37   :  { %1149 = vmatprep.mubr.msk.f32.mxu0 %vm1326_vm1, %v1327_v5  ;;  %1237 = vmatpush3.bf16.msra.mxu0 %v1425_v52 }
  0x38   :  { %1238 = vmatprep.subr.bf16.mxu0 %v1325_v2 }
  0x3b   :  { %1240 = vmatpush3.bf16.msra.mxu0 %v1436_v55 }
  0x3c   :  { %1147 = vmatprep.subr.mxu0 %v1327_v5 }
  0x3f   :  { %1148 = vmatpush3.msra.mxu0 %v1427_v53 }
  0x40   :  { %1241 = vmatprep.subr.bf16.mxu0 %v1325_v2 }
 0x109   :  { %v481_v28 = vpop.f32.mrb[0].mxu0 }
 0x10a   :  { %v1138_v29 = vpop.f32.mrb[1].mxu0  ;;  %v486_v30 = vsel %vm485_vm5, %v481_v28, -inf }
 0x10b   :  { %487 = vmax.xlane.f32.xlu0 %v486_v30 }
 0x198   :  { %v488_v31 = vpop.xlane.xlu0 %487 }
 0x199   :  { %v489_v32 = vsub.f32 %v481_v28, %v488_v31 }
 0x19b   :  { %v490_v33 = vmul.f32 1.442695, %v489_v32 }
 0x19d   :  { %1297 = vpow2.f32 %v490_v33 }
 0x1a7   :  { %v1298_v34 = vpop.eup %1297 }
 0x1a8   :  { %v492_v35 = vsel %vm485_vm5, %v1298_v34, 0.0 }
 0x1a9   :  { %493 = vadd.xlane.f32.xlu0 %v492_v35 }
 0x236   :  { %v494_v50 = vpop.xlane.xlu0 %493 }
 0x237   :  { %1299 = vrcp.f32 %v494_v50 }
 0x241   :  { %v1300_v58 = vpop.eup %1299 }
 0x242   :  { %v496_v59 = vmul.f32 %v1300_v58, %v1298_v34 }
 0x244   :  { %499 = vrot.lane.b32.xlu1 %v496_v59, %s1329_s3 }
 0x2b6   :  { %v500_v7 = vpop.permute.xlu1 %499 }
 0x2b7   :  { %v503_v8 = vsel %vm502_vm6, %v497_v6, %v500_v7 }
 0x2b8   :  { %v518_v9 = vsel %vm516_vm7, %v503_v8, 0 }
 0x2b9   :  { %v590_v12 = vand.u32 4294901760, %v518_v9 }
 0x2bb   :  { %v591_v13 = vsub.f32 %v518_v9, %v590_v12 }
 0x2bd   :  { %v592_v16 = vand.u32 4294901760, %v591_v13  ;;  %1176 = vmatmul.mubr.f32.vlgmr.msra.gmra.mrb[0].mxu1 %v591_v13 }
 0x2be   :  { %1255 = vmatpush3.bf16.msra.mxu1 %v1425_v52  ;;  %1188 = vmatprep.mubr.msk.f32.mxu1 %vm1326_vm1, %v1327_v5 }
 0x2bf   :  { %1256 = vmatprep.subr.bf16.mxu1 %v1325_v2  ;;  %v593_v17 = vsub.f32 %v591_v13, %v592_v16 }
 0x2c1   :  { %v594_v20 = vand.u32 4294901760, %v593_v17 }
 0x2c2   :  { %1258 = vmatpush3.bf16.msra.mxu1 %v1436_v55 }
 0x2c3   :  { %1150 = vmatmul.mubr.f32.vlgmr.msra.gmra.mrb[2].mxu0 %v594_v20  ;;  %1186 = vmatprep.subr.mxu1 %v1327_v5 }
 0x2c4   :  { %1243 = vmatpush3.bf16.msra.mxu0 %v1242_v19  ;;  %1162 = vmatprep.mubr.msk.f32.mxu0 %vm1326_vm1, %v1327_v5 }
 0x2c5   :  { %1244 = vmatprep.subr.bf16.mxu0 %v1325_v2 }
 0x2c6   :  { %1187 = vmatpush3.msra.mxu1 %v1427_v53 }
 0x2c7   :  { %1189 = vmatmul.mubr.f32.vlgmr.msra.gmra.mrb[0].mxu1 %v592_v16  ;;  %1259 = vmatprep.subr.bf16.mxu1 %v1325_v2 }
 0x2c8   :  { %1246 = vmatpush3.bf16.msra.mxu0 %v1245_v0  ;;  %1261 = vmatpush3.bf16.msra.mxu1 %v1260_v21 }
 0x2c9   :  { %1160 = vmatprep.subr.mxu0 %v1327_v5  ;;  %1262 = vmatprep.subr.bf16.mxu1 %v1325_v2 }
 0x2ca   :  { %1201 = vmatprep.mubr.msk.f32.mxu1 %vm1326_vm1, %v1327_v5 }
 0x2cc   :  { %1161 = vmatpush3.msra.mxu0 %v633_v23  ;;  %1264 = vmatpush3.bf16.msra.mxu1 %v1263_v1 }
 0x2cd   :  { %1163 = vmatmul.mubr.f32.vlgmr.msra.gmra.mrb[2].mxu0 %v590_v12  ;;  %1199 = vmatprep.subr.mxu1 %v1327_v5 }
 0x2d0   :  { %1200 = vmatpush3.msra.mxu1 %v631_v18 }
 0x2d1   :  { %1202 = vmatmul.mubr.f32.vlgmr.msra.gmra.mrb[0].mxu1 %v590_v12  ;;  %1265 = vmatprep.subr.bf16.mxu1 %v1325_v2 }
 0x2d2   :  { %1267 = vmatpush3.bf16.msra.mxu1 %v1425_v52  ;;  %1214 = vmatprep.mubr.msk.f32.mxu1 %vm1326_vm1, %v1327_v5 }
 0x2d3   :  { %1268 = vmatprep.subr.bf16.mxu1 %v1325_v2 }
 0x2d6   :  { %1270 = vmatpush3.bf16.msra.mxu1 %v1436_v55 }
 0x2d7   :  { %1212 = vmatprep.subr.mxu1 %v1327_v5 }
 0x2da   :  { %1213 = vmatpush3.msra.mxu1 %v1427_v53 }
 0x2db   :  { %1215 = vmatmul.mubr.f32.vlgmr.msra.gmra.mrb[0].mxu1 %v590_v12 }
 0x3a0   :  { %v692_v24 = vpop.f32.mrb[2].mxu0 }
 0x3a1   :  { %v1164_v25 = vpop.f32.mrb[3].mxu0  ;;  %v1271_v27 = vadd.f32 %v1042_v26, %v692_v24 }
 0x3ae   :  { %v1014_v28 = vpop.f32.mrb[0].mxu1 }
 0x3af   :  { %v1272_v29 = vadd.f32 %v1271_v27, %v1014_v28  ;;  %v1216_v30 = vpop.f32.mrb[1].mxu1 }
 0x3b1   :  { %v1018_v2 = vmul.f32 0.01, %v1272_v29 }
 0x3b3   :  { %v1019_v31 = vmax.f32 %v1272_v29, %v1018_v2 }
 0x3b5   :  { %1020 = vst.msk [vmem:[#allocation2] sm:$0xff] %vm502_vm6, %v1019_v31 }
 0x3b6   :  { %1312 = shalt.err (!%p1309_p4)
}
 0x3b7   :  { %s1313_s12 = scalar_lea.hbm %s1498_s5, 128 }
 0x3b8   :  { %p1314_p5 = scmp.ne.s32.totalorder %s1498_s5, %s1313_s12  ;;  %p1317_p6 = scmp.lt.u32.totalorder %s1313_s12, %s1498_s5 }
 0x3ba   :  { %p1319_p7 = pnand %p1317_p6, %p1314_p5 }
 0x3bc   :  { %1322 = shalt.err (!%p1319_p7)
}
 0x3bd   :  { %1030 = dma.vmem_to_hbm [thread:$0]  %s1028_s9, 128, %s1498_s5, [#allocation3]  }
 0x3be   :  { %1323 = dma.done.wait [#allocation3], 128  }
 0x3bf   :  { %1324 = vsyncadd [#allocation3], 4294967168 }
 0x3c0   :  { %1034 = vsyncpa [#allocation3], 1 }

// kernel: forward.2
= control target key start
LH: loop header
LB: loop body
LE: loop exit
PB: predicated region body
PF: predicated region fallthrough
CT: control target
= control target key end

     0   :  { %s8643_s0 = inlined_call_operand.vmem [shape: f32[8,32], index: 0, kind: input, shape index: {}]   ;;  %s8644_s1 = inlined_call_operand.hbm [shape: f32[16,32], index: 1, kind: input, shape index: {}]   ;;  %s8645_s2 = inlined_call_operand.vmem [shape: f32[32,96], index: 2, kind: input, shape index: {}]   ;;  %s8646_s3 = inlined_call_operand.hbm [shape: f32[3,96], index: 3, kind: input, shape index: {}]   ;;  %s8647_s4 = inlined_call_operand.vmem [shape: f32[32,96], index: 4, kind: input, shape index: {}]   ;;  %s8648_s5 = inlined_call_operand.hbm [shape: f32[3,96], index: 5, kind: input, shape index: {}]   ;;  %s8649_s6 = inlined_call_operand.hbm [shape: f32[16,80], index: 6, kind: input, shape index: {}]   ;;  %s8650_s7 = inlined_call_operand.hbm [shape: f32[3,80], index: 7, kind: input, shape index: {}]   ;;  %s8651_s8 = inlined_call_operand.hbm [shape: f32[16,32], index: 8, kind: input, shape index: {}]   ;;  %s8652_s9 = inlined_call_operand.vmem [shape: f32[1,32], index: 9, kind: input, shape index: {}]   ;;  %s8653_s10 = inlined_call_operand.hbm [shape: f32[16,16], index: 10, kind: input, shape index: {}]   ;;  %s8654_s11 = inlined_call_operand.hbm [shape: f32[1,16], index: 11, kind: input, shape index: {}]   ;;  %s8655_s12 = inlined_call_operand.vmem [shape: f32[16,1], index: 12, kind: input, shape index: {}]   ;;  %s8656_s13 = inlined_call_operand.<no memory space> [shape: f32[1,1], index: 13, kind: input, shape index: {}]   ;;  %s8657_s14 = inlined_call_operand.vmem [shape: f32[8,16], index: 14, kind: output, shape index: {0}]   ;;  %s8658_s15 = inlined_call_operand.vmem [shape: f32[1,16], index: 15, kind: output, shape index: {1}]  }
   0x1   :  { %v21_v0 = vstv %s8656_s13 }
   0x2   :  { %22 = vst [vmem:[#allocation2] sm:$0x1] %v21_v0 }
   0x3   :  { %23 = vsyncpa [#allocation4], 0 }
   0x4   :  { %24 = vsyncpa [#allocation6], 0 }
   0x5   :  { %25 = vsyncpa [#allocation9], 0 }
   0x6   :  { %26 = vsyncpa [#allocation12], 0 }
   0x7   :  { %27 = vsyncpa [#allocation15], 0  ;;  %s8097_s20 = smov [#allocation5]   ;;  %s7911_s24 = scalar_lea.hbm %s8646_s3, 64 }
   0x8   :  { %s50_s21 = sshll.u32 %s8097_s20, 4  ;;  %p7912_p0 = scmp.ne.s32.totalorder %s8646_s3, %s7911_s24  ;;  %s51_s21 = int_to_ptr.vmem [resolvable:$true] %s50_s21 }
   0x9   :  { %p7915_p1 = scmp.lt.u32.totalorder %s7911_s24, %s8646_s3 }
   0xb   :  { %p7917_p2 = pnand %p7915_p1, %p7912_p0 }
   0xd   :  { %7920 = shalt.err (!%p7917_p2)
}
   0xe   :  { %s7921_s13 = scalar_lea.vmem %s51_s21, 64  ;;  %p7926_p4 = scmp.lt.s32.totalorder %s51_s21, %s51_s21 }
   0xf   :  { %p7922_p3 = scmp.ne.s32.totalorder %s51_s21, %s7921_s13  ;;  %p7927_p5 = scmp.lt.s32.totalorder %s7921_s13, %s7921_s13 }
  0x11   :  { %p7928_p6 = por %p7927_p5, %p7926_p4 }
  0x13   :  { %p7929_p7 = pnand %p7928_p6, %p7922_p3 }
  0x15   :  { %7932 = shalt.err (!%p7929_p7)
}
  0x16   :  { %53 = dma.hbm_to_vmem [thread:$0]  %s8646_s3, 64, %s51_s21, [#allocation6]  }
  0x17   :  { %s8098_s16 = smov [#allocation8]   ;;  %s8099_s18 = smov [#allocation11]  }
  0x18   :  { %s71_s17 = sshll.u32 %s8098_s16, 4  ;;  %s93_s19 = sshll.u32 %s8099_s18, 4  ;;  %s72_s17 = int_to_ptr.vmem [resolvable:$true] %s71_s17  ;;  %s94_s19 = int_to_ptr.vmem [resolvable:$true] %s93_s19 }
  0x19   :  { %s7933_s23 = scalar_lea.hbm %s8649_s6, 256 }
  0x1a   :  { %p7934_p8 = scmp.ne.s32.totalorder %s8649_s6, %s7933_s23  ;;  %p7937_p9 = scmp.lt.u32.totalorder %s7933_s23, %s8649_s6 }
  0x1c   :  { %p7939_p10 = pnand %p7937_p9, %p7934_p8 }
  0x1e   :  { %7942 = shalt.err (!%p7939_p10)
}
  0x1f   :  { %s7943_s3 = scalar_lea.vmem %s72_s17, 256  ;;  %p7948_p12 = scmp.lt.s32.totalorder %s72_s17, %s72_s17 }
  0x20   :  { %p7944_p11 = scmp.ne.s32.totalorder %s72_s17, %s7943_s3  ;;  %p7949_p13 = scmp.lt.s32.totalorder %s7943_s3, %s7943_s3 }
  0x22   :  { %p7950_p0 = por %p7949_p13, %p7948_p12 }
  0x24   :  { %p7951_p1 = pnand %p7950_p0, %p7944_p11 }
  0x26   :  { %7954 = shalt.err (!%p7951_p1)
}
  0x27   :  { %s8100_s21 = smov 128   ;;  %s8101_s28 = smov 8  }
  0x28   :  { %77 = dma.hbm_to_vmem [thread:$0]  %s8649_s6, 256, %s72_s17, [#allocation9], %s8100_s21, %s8100_s21, %s8101_s28  }
  0x29   :  { %s7955_s18 = scalar_lea.hbm %s8651_s8, 256 }
  0x2a   :  { %p7956_p2 = scmp.ne.s32.totalorder %s8651_s8, %s7955_s18  ;;  %p7959_p3 = scmp.lt.u32.totalorder %s7955_s18, %s8651_s8 }
  0x2c   :  { %p7961_p4 = pnand %p7959_p3, %p7956_p2 }
  0x2e   :  { %7964 = shalt.err (!%p7961_p4)
}
  0x2f   :  { %s7965_s25 = scalar_lea.vmem %s94_s19, 256  ;;  %p7970_p6 = scmp.lt.s32.totalorder %s94_s19, %s94_s19 }
  0x30   :  { %p7966_p5 = scmp.ne.s32.totalorder %s94_s19, %s7965_s25  ;;  %p7971_p7 = scmp.lt.s32.totalorder %s7965_s25, %s7965_s25 }
  0x32   :  { %p7972_p8 = por %p7971_p7, %p7970_p6 }
  0x34   :  { %p7973_p9 = pnand %p7972_p8, %p7966_p5 }
  0x36   :  { %7976 = shalt.err (!%p7973_p9)
}
  0x37   :  { %99 = dma.hbm_to_vmem [thread:$0]  %s8651_s8, 256, %s94_s19, [#allocation12], %s8100_s21, %s8100_s21, %s8101_s28  }
  0x38   :  { %s8102_s26 = smov [#allocation3]   ;;  %s8103_s3 = smov [#allocation7]  }
  0x39   :  { %s35_s27 = sshll.u32 %s8102_s26, 4  ;;  %s62_s13 = sshll.u32 %s8103_s3, 4  ;;  %s36_s27 = int_to_ptr.vmem [resolvable:$true] %s35_s27  ;;  %s63_s13 = int_to_ptr.vmem [resolvable:$true] %s62_s13 }
  0x3a   :  { %s7977_s16 = scalar_lea.hbm %s8644_s1, 256 }
  0x3b   :  { %p7978_p10 = scmp.ne.s32.totalorder %s8644_s1, %s7977_s16  ;;  %p7981_p11 = scmp.lt.u32.totalorder %s7977_s16, %s8644_s1 }
  0x3d   :  { %p7983_p12 = pnand %p7981_p11, %p7978_p10 }
  0x3f   :  { %7986 = shalt.err (!%p7983_p12)
}
  0x40   :  { %s7987_s8 = scalar_lea.vmem %s36_s27, 256  ;;  %p7992_p0 = scmp.lt.s32.totalorder %s36_s27, %s36_s27 }
  0x41   :  { %p7988_p13 = scmp.ne.s32.totalorder %s36_s27, %s7987_s8  ;;  %p7993_p1 = scmp.lt.s32.totalorder %s7987_s8, %s7987_s8 }
  0x43   :  { %p7994_p2 = por %p7993_p1, %p7992_p0 }
  0x45   :  { %p7995_p3 = pnand %p7994_p2, %p7988_p13 }
  0x47   :  { %7998 = shalt.err (!%p7995_p3)
}
  0x48   :  { %41 = dma.hbm_to_vmem [thread:$0]  %s8644_s1, 256, %s36_s27, [#allocation4], %s8100_s21, %s8100_s21, %s8101_s28  }
  0x49   :  { %s7999_s17 = scalar_lea.hbm %s8648_s5, 64 }
  0x4a   :  { %p8000_p4 = scmp.ne.s32.totalorder %s8648_s5, %s7999_s17  ;;  %p8003_p5 = scmp.lt.u32.totalorder %s7999_s17, %s8648_s5 }
  0x4c   :  { %p8005_p6 = pnand %p8003_p5, %p8000_p4 }
  0x4e   :  { %8008 = shalt.err (!%p8005_p6)
}
  0x4f   :  { %s8009_s16 = scalar_lea.vmem %s63_s13, 64  ;;  %p8014_p8 = scmp.lt.s32.totalorder %s63_s13, %s63_s13 }
  0x50   :  { %p8010_p7 = scmp.ne.s32.totalorder %s63_s13, %s8009_s16  ;;  %p8015_p9 = scmp.lt.s32.totalorder %s8009_s16, %s8009_s16 }
  0x52   :  { %p8016_p10 = por %p8015_p9, %p8014_p8 }
  0x54   :  { %p8017_p11 = pnand %p8016_p10, %p8010_p7 }
  0x56   :  { %8020 = shalt.err (!%p8017_p11)
}
  0x57   :  { %65 = dma.hbm_to_vmem [thread:$0]  %s8648_s5, 64, %s63_s13, [#allocation6]  }
  0x58   :  { %s8104_s18 = smov [#allocation10]   ;;  %s8105_s22 = smov [#allocation13]  }
  0x59   :  { %s84_s20 = sshll.u32 %s8104_s18, 4  ;;  %s107_s23 = sshll.u32 %s8105_s22, 4  ;;  %s85_s20 = int_to_ptr.vmem [resolvable:$true] %s84_s20  ;;  %s108_s23 = int_to_ptr.vmem [resolvable:$true] %s107_s23 }
  0x5a   :  { %s8021_s24 = scalar_lea.hbm %s8650_s7, 64 }
  0x5b   :  { %p8022_p12 = scmp.ne.s32.totalorder %s8650_s7, %s8021_s24  ;;  %p8025_p13 = scmp.lt.u32.totalorder %s8021_s24, %s8650_s7 }
  0x5d   :  { %p8027_p0 = pnand %p8025_p13, %p8022_p12 }
  0x5f   :  { %8030 = shalt.err (!%p8027_p0)
}
  0x60   :  { %s8031_s5 = scalar_lea.vmem %s85_s20, 64  ;;  %p8036_p2 = scmp.lt.s32.totalorder %s85_s20, %s85_s20 }
  0x61   :  { %p8032_p1 = scmp.ne.s32.totalorder %s85_s20, %s8031_s5  ;;  %p8037_p3 = scmp.lt.s32.totalorder %s8031_s5, %s8031_s5 }
  0x63   :  { %p8038_p4 = por %p8037_p3, %p8036_p2 }
  0x65   :  { %p8039_p5 = pnand %p8038_p4, %p8032_p1 }
  0x67   :  { %8042 = shalt.err (!%p8039_p5)
}
  0x68   :  { %87 = dma.hbm_to_vmem [thread:$0]  %s8650_s7, 64, %s85_s20, [#allocation9]  }
  0x69   :  { %s8043_s16 = scalar_lea.hbm %s8653_s10, 256 }
  0x6a   :  { %p8044_p6 = scmp.ne.s32.totalorder %s8653_s10, %s8043_s16  ;;  %p8047_p7 = scmp.lt.u32.totalorder %s8043_s16, %s8653_s10 }
  0x6c   :  { %p8049_p8 = pnand %p8047_p7, %p8044_p6 }
  0x6e   :  { %8052 = shalt.err (!%p8049_p8)
}
  0x6f   :  { %s8053_s8 = scalar_lea.vmem %s108_s23, 256  ;;  %p8058_p10 = scmp.lt.s32.totalorder %s108_s23, %s108_s23 }
  0x70   :  { %p8054_p9 = scmp.ne.s32.totalorder %s108_s23, %s8053_s8  ;;  %p8059_p11 = scmp.lt.s32.totalorder %s8053_s8, %s8053_s8 }
  0x72   :  { %p8060_p12 = por %p8059_p11, %p8058_p10 }
  0x74   :  { %p8061_p13 = pnand %p8060_p12, %p8054_p9 }
  0x76   :  { %8064 = shalt.err (!%p8061_p13)
}
  0x77   :  { %113 = dma.hbm_to_vmem [thread:$0]  %s8653_s10, 256, %s108_s23, [#allocation12], %s8100_s21, %s8100_s21, %s8101_s28  }
  0x78   :  { %s8106_s19 = smov [#allocation14]   ;;  %s8065_s17 = scalar_lea.hbm %s8654_s11, 16 }
  0x79   :  { %s120_s24 = sshll.u32 %s8106_s19, 4  ;;  %p8066_p0 = scmp.ne.s32.totalorder %s8654_s11, %s8065_s17  ;;  %s121_s24 = int_to_ptr.vmem [resolvable:$true] %s120_s24 }
  0x7a   :  { %p8069_p1 = scmp.lt.u32.totalorder %s8065_s17, %s8654_s11 }
  0x7c   :  { %p8071_p2 = pnand %p8069_p1, %p8066_p0 }
  0x7e   :  { %8074 = shalt.err (!%p8071_p2)
}
  0x7f   :  { %s8075_s29 = scalar_lea.vmem %s121_s24, 16  ;;  %s8079_s10 = scalar_lea.vmem %s121_s24, 32 }
  0x80   :  { %p8076_p3 = scmp.ne.s32.totalorder %s121_s24, %s8075_s29  ;;  %p8080_p4 = scmp.lt.s32.totalorder %s121_s24, %s121_s24 }
  0x81   :  { %p8081_p5 = scmp.lt.s32.totalorder %s8079_s10, %s8075_s29 }
  0x83   :  { %p8082_p6 = por %p8081_p5, %p8080_p4 }
  0x85   :  { %p8083_p7 = pnand %p8082_p6, %p8076_p3 }
  0x87   :  { %8086 = shalt.err (!%p8083_p7)
}
  0x88   :  { %123 = dma.hbm_to_vmem [thread:$0]  %s8654_s11, 16, %s121_s24, [#allocation15]  }
  0x89   :  { %8087 = dma.done.wait [#allocation4], 256  }
  0x8a   :  { %8088 = vsyncadd [#allocation4], 4294967040 }
  0x8b   :  { %8089 = dma.done.wait [#allocation6], 128  }
  0x8c   :  { %8090 = vsyncadd [#allocation6], 4294967168 }
  0x8d   :  { %8091 = dma.done.wait [#allocation9], 320  }
  0x8e   :  { %8092 = vsyncadd [#allocation9], 4294966976 }
  0x8f   :  { %8093 = dma.done.wait [#allocation12], 512  }
  0x90   :  { %8094 = vsyncadd [#allocation12], 4294966784 }
  0x91   :  { %8095 = dma.done.wait [#allocation15], 16  }
  0x92   :  { %8096 = vsyncadd [#allocation15], 4294967280  ;;  %v8107_v1 = vmov 0.0|0.0   ;;  %vm8108_vm0 = vmmov 0   ;;  %v8109_v2 = vmov 0.0   ;;  %vm164_vm1 = vcmask 261120  }
  0x93   :  { %7526 = vmatprep.subr.bf16.mxu0 %v8107_v1  ;;  %7005 = vmatprep.mubr.msk.f32.mxu0 %vm8108_vm0, %v8109_v2  ;;  %v155_v3 = vld [vmem:[%s8645_s2] sm:$0xff]  ;;  %v156_v4 = vld [vmem:[%s8645_s2 + $0x8] sm:$0xff]  ;;  %v157_v5 = vld [vmem:[%s8645_s2 + $0x10] sm:$0xff]  ;;  %s8111_s26 = smov 64   ;;  %vm1118_vm2 = vcmask 64512   ;;  %vm2665_vm3 = vcmask 130048  }
  0x94   :  { %7520 = vmatprep.subr.bf16.mxu1 %v8107_v1  ;;  %6994 = vmatprep.mubr.msk.f32.mxu1 %vm8108_vm0, %v8109_v2  ;;  %v169_v6 = vand.u32 4294901760, %v155_v3  ;;  %v172_v7 = vand.u32 4294901760, %v156_v4  ;;  %v158_v8 = vld [vmem:[%s8645_s2 + $0x18] sm:$0xff]  ;;  %v175_v9 = vand.u32 4294901760, %v157_v5  ;;  %v8326_v10 = vld [vmem:[%s8643_s0] sm:$0xff]  ;;  %v1591_v43 = vld [vmem:[%s8647_s4 + $0x8] sm:$0xff] }
  0x95   :  { %v178_v11 = vand.u32 4294901760, %v158_v8  ;;  %v166_v12 = vsel %vm164_vm1, %v8326_v10, 0  ;;  %v1590_v42 = vld [vmem:[%s8647_s4] sm:$0xff]  ;;  %v1592_v44 = vld [vmem:[%s8647_s4 + $0x10] sm:$0xff]  ;;  %v1609_v46 = vand.u32 4294901760, %v1591_v43  ;;  %v1593_v47 = vld [vmem:[%s8647_s4 + $0x18] sm:$0xff] }
  0x96   :  { %v249_v13 = vsub.f32 %v155_v3, %v169_v6  ;;  %v256_v14 = vsub.f32 %v156_v4, %v172_v7  ;;  %v263_v15 = vsub.f32 %v157_v5, %v175_v9  ;;  %v237_v17 = vand.u32 4294901760, %v166_v12  ;;  %v8365_v49 = vld [vmem:[#allocation3 + $0x8] sm:$0xff]  ;;  %s8110_s4 = smov 96   ;;  %s8112_s29 = smov 112  }
  0x97   :  { %v270_v16 = vsub.f32 %v158_v8, %v178_v11  ;;  %v7521_v18 = vpack.c.bf16 %v172_v7, %v169_v6  ;;  %v7524_v28 = vpack.c.bf16 %v178_v11, %v175_v9  ;;  %v1606_v45 = vand.u32 4294901760, %v1590_v42 }
  0x98   :  { %v250_v19 = vand.u32 4294901760, %v249_v13  ;;  %v257_v20 = vand.u32 4294901760, %v256_v14  ;;  %v264_v21 = vand.u32 4294901760, %v263_v15  ;;  %v238_v23 = vsub.f32 %v166_v12, %v237_v17 }
  0x99   :  { %v271_v22 = vand.u32 4294901760, %v270_v16  ;;  %7522 = vmatpush3.bf16.msra.mxu1 %v7521_v18  ;;  %v7533_v38 = vpack.c.bf16 %v256_v14, %v249_v13  ;;  %v7536_v39 = vpack.c.bf16 %v270_v16, %v263_v15  ;;  %v1612_v48 = vand.u32 4294901760, %v1592_v44 }
  0x9a   :  { %v251_v24 = vsub.f32 %v249_v13, %v250_v19  ;;  %v258_v25 = vsub.f32 %v256_v14, %v257_v20  ;;  %v265_v26 = vsub.f32 %v263_v15, %v264_v21  ;;  %7523 = vmatprep.subr.bf16.mxu1 %v8107_v1  ;;  %v239_v29 = vand.u32 4294901760, %v238_v23 }
  0x9b   :  { %v272_v27 = vsub.f32 %v270_v16, %v271_v22  ;;  %v7545_v40 = vpack.c.bf16 %v257_v20, %v250_v19  ;;  %v7548_v41 = vpack.c.bf16 %v271_v22, %v264_v21  ;;  %v1615_v50 = vand.u32 4294901760, %v1593_v47 }
  0x9c   :  { %v252_v30 = vand.u32 4294901760, %v251_v24  ;;  %v259_v31 = vand.u32 4294901760, %v258_v25  ;;  %v266_v32 = vand.u32 4294901760, %v265_v26  ;;  %v240_v34 = vsub.f32 %v238_v23, %v239_v29  ;;  %v159_v25 = vld [vmem:[#allocation5] sm:$0x7] }
  0x9d   :  { %v273_v33 = vand.u32 4294901760, %v272_v27  ;;  %7525 = vmatpush3.bf16.msra.mxu1 %v7524_v28  ;;  %v1603_v51 = vsel %vm164_vm1, %v8365_v49, 0  ;;  %v7556_v52 = vpack.c.bf16 %v1609_v46, %v1606_v45  ;;  %v1696_v54 = vsub.f32 %v1590_v42, %v1606_v45 }
  0x9e   :  { %v7527_v35 = vpack.c.bf16 %v259_v31, %v252_v30  ;;  %7052 = vmatprep.subr.mxu1 %v8109_v2  ;;  %v241_v36 = vand.u32 4294901760, %v240_v34  ;;  %v1684_v53 = vand.u32 4294901760, %v1603_v51  ;;  %v1703_v55 = vsub.f32 %v1591_v43, %v1609_v46 }
  0x9f   :  { %v7530_v37 = vpack.c.bf16 %v273_v33, %v266_v32  ;;  %v7560_v56 = vpack.c.bf16 %v1615_v50, %v1612_v48  ;;  %v1710_v57 = vsub.f32 %v1592_v44, %v1612_v48  ;;  %v1717_v58 = vsub.f32 %v1593_v47, %v1615_v50 }
  0xa0   :  { %7528 = vmatpush3.bf16.msra.mxu0 %v7527_v35  ;;  %6995 = vmatmul.mubr.f32.vlgmr.msra.gmra.mrb[0].mxu1 %v241_v36  ;;  %v1685_v59 = vsub.f32 %v1603_v51, %v1684_v53  ;;  %v1697_v60 = vand.u32 4294901760, %v1696_v54  ;;  %v1704_v61 = vand.u32 4294901760, %v1703_v55  ;;  %v7572_v16 = vpack.c.bf16 %v1703_v55, %v1696_v54 }
  0xa1   :  { %7529 = vmatprep.subr.bf16.mxu0 %v8107_v1  ;;  %7054 = vmatprep.mubr.msk.f32.mxu1 %vm8108_vm0, %v8109_v2  ;;  %v1711_v62 = vand.u32 4294901760, %v1710_v57  ;;  %v1718_v63 = vand.u32 4294901760, %v1717_v58  ;;  %v160_v22 = vlaneseq  ;;  %vm6711_vm6 = vcmask 122880  }
  0xa2   :  { %v1686_v0 = vand.u32 4294901760, %v1685_v59  ;;  %v1698_v3 = vsub.f32 %v1696_v54, %v1697_v60  ;;  %v1705_v4 = vsub.f32 %v1703_v55, %v1704_v61 }
  0xa3   :  { %v1712_v5 = vsub.f32 %v1710_v57, %v1711_v62  ;;  %v1719_v6 = vsub.f32 %v1717_v58, %v1718_v63  ;;  %v7592_v19 = vpack.c.bf16 %v1718_v63, %v1711_v62 }
  0xa4   :  { %7531 = vmatpush3.bf16.msra.mxu0 %v7530_v37  ;;  %v1687_v7 = vsub.f32 %v1685_v59, %v1686_v0  ;;  %v1699_v8 = vand.u32 4294901760, %v1698_v3  ;;  %v1706_v9 = vand.u32 4294901760, %v1705_v4 }
  0xa5   :  { %7532 = vmatprep.subr.bf16.mxu0 %v8107_v1  ;;  %v1713_v11 = vand.u32 4294901760, %v1712_v5  ;;  %v1720_v12 = vand.u32 4294901760, %v1719_v6 }
  0xa6   :  { %v1688_v13 = vand.u32 4294901760, %v1687_v7  ;;  %v7564_v14 = vpack.c.bf16 %v1706_v9, %v1699_v8 }
  0xa7   :  { %7006 = vmatmul.mubr.f32.vlgmr.msra.gmra.mrb[0].mxu0 %v237_v17  ;;  %v7568_v15 = vpack.c.bf16 %v1720_v12, %v1713_v11 }
  0xa8   :  { %7534 = vmatpush3.bf16.msra.mxu0 %v7533_v38  ;;  %7016 = vmatprep.mubr.msk.f32.mxu0 %vm8108_vm0, %v8109_v2 }
  0xa9   :  { %7535 = vmatprep.subr.bf16.mxu0 %v8107_v1 }
  0xac   :  { %7537 = vmatpush3.bf16.msra.mxu0 %v7536_v39 }
  0xad   :  { %7538 = vmatprep.subr.bf16.mxu0 %v8107_v1 }
  0xaf   :  { %7017 = vmatmul.mubr.f32.vlgmr.msra.gmra.mrb[0].mxu0 %v238_v23  ;;  %v161_v23 = vshrl.u32 %v160_v22, 7 }
  0xb0   :  { %7540 = vmatpush3.bf16.msra.mxu0 %v7521_v18  ;;  %7027 = vmatprep.mubr.msk.f32.mxu0 %vm8108_vm0, %v8109_v2 }
  0xb1   :  { %7541 = vmatprep.subr.bf16.mxu0 %v8107_v1  ;;  %v8369_v24 = vsub.s32 0, %v161_v23  ;;  %v8374_v32 = vsub.s32 2, %v161_v23 }
  0xb3   :  { %v163_v26 = vrot.slane %v159_v25, %v8369_v24  ;;  %v663_v36 = vrot.slane %v159_v25, %v8374_v32 }
  0xb4   :  { %7543 = vmatpush3.bf16.msra.mxu0 %v7524_v28 }
  0xb5   :  { %7544 = vmatprep.subr.bf16.mxu0 %v8107_v1 }
  0xb7   :  { %7028 = vmatmul.mubr.f32.vlgmr.msra.gmra.mrb[0].mxu0 %v239_v29 }
  0xb8   :  { %7546 = vmatpush3.bf16.msra.mxu0 %v7545_v40  ;;  %7038 = vmatprep.mubr.msk.f32.mxu0 %vm8108_vm0, %v8109_v2 }
  0xb9   :  { %7547 = vmatprep.subr.bf16.mxu0 %v8107_v1 }
  0xbc   :  { %7549 = vmatpush3.bf16.msra.mxu0 %v7548_v41 }
  0xbd   :  { %7550 = vmatprep.subr.bf16.mxu0 %v8107_v1 }
  0xbf   :  { %7039 = vmatmul.mubr.f32.vlgmr.msra.gmra.mrb[0].mxu0 %v237_v17 }
  0xc0   :  { %7552 = vmatpush3.bf16.msra.mxu0 %v7521_v18  ;;  %7049 = vmatprep.mubr.msk.f32.mxu0 %vm8108_vm0, %v8109_v2  ;;  %v7588_v18 = vpack.c.bf16 %v1704_v61, %v1697_v60 }
  0xc1   :  { %7553 = vmatprep.subr.bf16.mxu0 %v8107_v1 }
  0xc4   :  { %7555 = vmatpush3.bf16.msra.mxu0 %v7524_v28  ;;  %v8372_v28 = vsub.s32 1, %v161_v23 }
  0xc5   :  { %7557 = vmatprep.subr.bf16.mxu0 %v7556_v52 }
  0xc6   :  { %v658_v34 = vrot.slane %v159_v25, %v8372_v28 }
  0xc7   :  { %7050 = vmatmul.mubr.f32.vlgmr.msra.gmra.mrb[0].mxu0 %v237_v17  ;;  %v7576_v17 = vpack.c.bf16 %v1717_v58, %v1710_v57 }
  0xc8   :  { %7109 = vmatprep.mubr.msk.f32.mxu0 %vm8108_vm0, %v8109_v2  ;;  %7559 = vmatpush3.bf16.msra.mxu0 %v7556_v52 }
  0xc9   :  { %7561 = vmatprep.subr.bf16.mxu0 %v7560_v56 }
  0xcc   :  { %7563 = vmatpush3.bf16.msra.mxu0 %v7560_v56 }
  0xcd   :  { %7565 = vmatprep.subr.bf16.mxu0 %v7564_v14 }
  0xcf   :  { %7121 = vmatmul.mubr.f32.vlgmr.msra.gmra.mrb[2].mxu0 %v1688_v13 }
  0xd0   :  { %7567 = vmatpush3.bf16.msra.mxu0 %v7564_v14 }
  0xd1   :  { %7569 = vmatprep.subr.bf16.mxu0 %v7568_v15 }
  0xd4   :  { %7571 = vmatpush3.bf16.msra.mxu0 %v7568_v15 }
  0xd5   :  { %7573 = vmatprep.subr.bf16.mxu0 %v7572_v16 }
  0xd7   :  { %7132 = vmatmul.mubr.f32.vlgmr.msra.gmra.mrb[2].mxu0 %v1684_v53 }
  0xd8   :  { %7575 = vmatpush3.bf16.msra.mxu0 %v7572_v16 }
  0xd9   :  { %7577 = vmatprep.subr.bf16.mxu0 %v7576_v17 }
  0xdc   :  { %7579 = vmatpush3.bf16.msra.mxu0 %v7576_v17 }
  0xdd   :  { %7581 = vmatprep.subr.bf16.mxu0 %v7556_v52 }
  0xdf   :  { %7143 = vmatmul.mubr.f32.vlgmr.msra.gmra.mrb[2].mxu0 %v1685_v59 }
  0xe0   :  { %7583 = vmatpush3.bf16.msra.mxu0 %v7556_v52 }
  0xe1   :  { %7585 = vmatprep.subr.bf16.mxu0 %v7560_v56 }
  0xe4   :  { %7587 = vmatpush3.bf16.msra.mxu0 %v7560_v56 }
  0xe5   :  { %7589 = vmatprep.subr.bf16.mxu0 %v7588_v18 }
  0xe7   :  { %7154 = vmatmul.mubr.f32.vlgmr.msra.gmra.mrb[2].mxu0 %v1686_v0 }
  0xe8   :  { %7591 = vmatpush3.bf16.msra.mxu0 %v7588_v18 }
  0xe9   :  { %7593 = vmatprep.subr.bf16.mxu0 %v7592_v19 }
  0xec   :  { %7595 = vmatpush3.bf16.msra.mxu0 %v7592_v19 }
  0xed   :  { %7597 = vmatprep.subr.bf16.mxu0 %v7556_v52 }
  0xef   :  { %7165 = vmatmul.mubr.f32.vlgmr.msra.gmra.mrb[2].mxu0 %v1684_v53 }
  0xf0   :  { %7599 = vmatpush3.bf16.msra.mxu0 %v7556_v52 }
  0xf1   :  { %7601 = vmatprep.subr.bf16.mxu0 %v7560_v56 }
  0xf4   :  { %7603 = vmatpush3.bf16.msra.mxu0 %v7560_v56 }
  0xf7   :  { %7176 = vmatmul.mubr.f32.vlgmr.msra.gmra.mrb[2].mxu0 %v1684_v53  ;;  %v1594_v53 = vld [vmem:[#allocation7] sm:$0x7] }
  0xf8   :  { %v1598_v54 = vrot.slane %v1594_v53, %v8369_v24  ;;  %v2140_v60 = vrot.slane %v1594_v53, %v8372_v28  ;;  %v2146_v0 = vrot.slane %v1594_v53, %v8374_v32 }
 0x173   :  { %v243_v20 = vpop.f32.mrb[0].mxu1 }
 0x174   :  { %v6996_v21 = vpop.f32.mrb[1].mxu1  ;;  %v244_v27 = vadd.f32 %v243_v20, %v163_v26 }
 0x19a   :  { %v649_v29 = vpop.f32.mrb[0].mxu0 }
 0x19b   :  { %v7731_v30 = vadd.f32 %v649_v29, %v244_v27  ;;  %v7051_v31 = vpop.f32.mrb[1].mxu0 }
 0x19d   :  { %v653_v33 = vmul.f32 0.01, %v7731_v30 }
 0x19f   :  { %v654_v35 = vmax.f32 %v7731_v30, %v653_v33 }
 0x1a1   :  { %v659_v37 = vmul.f32 %v658_v34, %v654_v35 }
 0x1a3   :  { %v664_v38 = vadd.f32 %v663_v36, %v659_v37 }
 0x1a5   :  { %666 = vrot.lane.b32.xlu0 %v664_v38, %s8110_s4  ;;  %v668_v39 = vsel %vm164_vm1, %v664_v38, 0 }
 0x1a6   :  { %v738_v40 = vand.u32 4294901760, %v668_v39 }
 0x1a8   :  { %v739_v41 = vsub.f32 %v668_v39, %v738_v40 }
 0x1a9   :  { %1138 = vrot.lane.b32.xlu0 %v664_v38, %s8111_s26 }
 0x1aa   :  { %v740_v42 = vand.u32 4294901760, %v739_v41 }
 0x1ac   :  { %v741_v45 = vsub.f32 %v739_v41, %v740_v42 }
 0x1ae   :  { %v742_v48 = vand.u32 4294901760, %v741_v45 }
 0x1ca   :  { %v7177_v55 = vpop.f32.mrb[2].mxu0 }
 0x1cb   :  { %v7733_v56 = vadd.f32 %v7177_v55, %v1598_v54  ;;  %v2123_v57 = vpop.f32.mrb[3].mxu0 }
 0x1cc   :  { %v7734_v58 = vadd.f32 %v2123_v57, %v1598_v54 }
 0x1cd   :  { %v2134_v59 = vmul.f32 0.01, %v7733_v56 }
 0x1ce   :  { %v2133_v61 = vmul.f32 0.01, %v7734_v58 }
 0x1cf   :  { %v2136_v62 = vmax.f32 %v7733_v56, %v2134_v59 }
 0x1d0   :  { %v2135_v63 = vmax.f32 %v7734_v58, %v2133_v61 }
 0x1d1   :  { %v2142_v3 = vmul.f32 %v2140_v60, %v2136_v62 }
 0x1d2   :  { %v2141_v4 = vmul.f32 %v2140_v60, %v2135_v63 }
 0x1d3   :  { %v8402_v6 = vadd.f32 %v2146_v0, %v2142_v3 }
 0x1d4   :  { %v8398_v5 = vadd.f32 %v2146_v0, %v2141_v4 }
 0x1d6   :  { %2151 = vrot.lane.b32.xlu1 %v8398_v5, %s8110_s4  ;;  %2693 = vrot.lane.b32.xlu0 %v8398_v5, %s8111_s26 }
 0x1da   :  { %2153 = vrot.lane.b32.xlu1 %v8402_v6, %s8110_s4 }
 0x1de   :  { %2695 = vrot.lane.b32.xlu1 %v8402_v6, %s8111_s26 }
 0x217   :  { %v667_v43 = vpop.permute.xlu0 %666 }
 0x218   :  { %v670_v44 = vsel %vm164_vm1, %v667_v43, 0 }
 0x219   :  { %v673_v46 = vand.u32 4294901760, %v670_v44 }
 0x21b   :  { %v750_v47 = vsub.f32 %v670_v44, %v673_v46  ;;  %7053 = vmatpush3.xpose.msra.mxu1 %v673_v46  ;;  %v8411_v7 = vpop.permute.xlu0 %1138 }
 0x21c   :  { %7057 = vmatprep.subr.mxu1 %v8109_v2  ;;  %v8414_v8 = vand.u32 4294901760, %v8411_v7 }
 0x21d   :  { %v751_v50 = vand.u32 4294901760, %v750_v47 }
 0x21e   :  { %7055 = vmatmul.mubr.f32.vlgmr.msra.gmra.mrb[2].mxu1 %v742_v48 }
 0x21f   :  { %v752_v51 = vsub.f32 %v750_v47, %v751_v50  ;;  %7059 = vmatprep.mubr.msk.f32.mxu1 %vm8108_vm0, %v8109_v2 }
 0x221   :  { %v753_v52 = vand.u32 4294901760, %v752_v51 }
 0x223   :  { %7058 = vmatpush3.xpose.msra.mxu1 %v753_v52 }
 0x224   :  { %7062 = vmatprep.subr.mxu1 %v8109_v2 }
 0x226   :  { %7060 = vmatmul.mubr.f32.vlgmr.msra.gmra.mrb[2].mxu1 %v738_v40 }
 0x227   :  { %7063 = vmatpush3.xpose.msra.mxu1 %v750_v47  ;;  %7064 = vmatprep.mubr.msk.f32.mxu1 %vm8108_vm0, %v8109_v2 }
 0x228   :  { %7067 = vmatprep.subr.mxu1 %v8109_v2 }
 0x22e   :  { %7065 = vmatmul.mubr.f32.vlgmr.msra.gmra.mrb[2].mxu1 %v739_v41 }
 0x22f   :  { %7068 = vmatpush3.xpose.msra.mxu1 %v673_v46  ;;  %7069 = vmatprep.mubr.msk.f32.mxu1 %vm8108_vm0, %v8109_v2 }
 0x230   :  { %7072 = vmatprep.subr.mxu1 %v8109_v2 }
 0x236   :  { %7070 = vmatmul.mubr.f32.vlgmr.msra.gmra.mrb[2].mxu1 %v740_v42 }
 0x237   :  { %7073 = vmatpush3.xpose.msra.mxu1 %v751_v50  ;;  %7074 = vmatprep.mubr.msk.f32.mxu1 %vm8108_vm0, %v8109_v2 }
 0x238   :  { %7077 = vmatprep.subr.mxu1 %v8109_v2 }
 0x23e   :  { %7075 = vmatmul.mubr.f32.vlgmr.msra.gmra.mrb[2].mxu1 %v738_v40 }
 0x23f   :  { %7078 = vmatpush3.xpose.msra.mxu1 %v673_v46  ;;  %7079 = vmatprep.mubr.msk.f32.mxu1 %vm8108_vm0, %v8109_v2 }
 0x240   :  { %7082 = vmatprep.subr.mxu1 %v8109_v2 }
 0x246   :  { %7080 = vmatmul.mubr.f32.vlgmr.msra.gmra.mrb[2].mxu1 %v738_v40 }
 0x247   :  { %7083 = vmatpush3.msra.mxu1 %v8414_v8  ;;  %7084 = vmatprep.mubr.msk.f32.mxu1 %vm8108_vm0, %v8109_v2 }
 0x248   :  { %7087 = vmatprep.subr.mxu1 %v8109_v2  ;;  %v2152_v9 = vpop.permute.xlu1 %2151  ;;  %v2694_v13 = vpop.permute.xlu0 %2693 }
 0x249   :  { %v2706_v15 = vand.u32 4294901760, %v2694_v13  ;;  %v2159_v20 = vsel %vm164_vm1, %v2152_v9, 0 }
 0x24a   :  { %v2164_v25 = vand.u32 4294901760, %v2159_v20 }
 0x24b   :  { %v2794_v17 = vsub.f32 %v2694_v13, %v2706_v15 }
 0x24c   :  { %v2154_v11 = vpop.permute.xlu1 %2153  ;;  %v2252_v30 = vsub.f32 %v2159_v20, %v2164_v25 }
 0x24d   :  { %v2795_v19 = vand.u32 4294901760, %v2794_v17  ;;  %v2161_v21 = vsel %vm164_vm1, %v2154_v11, 0  ;;  %v1222_v11 = vsub.f32 %v8411_v7, %v8414_v8  ;;  %v2155_v7 = vsel %vm164_vm1, %v8398_v5, 0 }
 0x24e   :  { %v2167_v26 = vand.u32 4294901760, %v2161_v21  ;;  %v2253_v37 = vand.u32 4294901760, %v2252_v30 }
 0x24f   :  { %v2796_v23 = vsub.f32 %v2794_v17, %v2795_v19 }
 0x250   :  { %v2696_v12 = vpop.permute.xlu1 %2695  ;;  %v8424_v31 = vpack.c.bf16 %v2167_v26, %v2164_v25  ;;  %v2259_v33 = vsub.f32 %v2161_v21, %v2167_v26  ;;  %v2254_v39 = vsub.f32 %v2252_v30, %v2253_v37  ;;  %v2157_v25 = vsel %vm164_vm1, %v8402_v6, 0  ;;  %v8477_v6 = vld [vmem:[#allocation3] sm:$0xff] }
 0x251   :  { %v2709_v14 = vand.u32 4294901760, %v2696_v12  ;;  %v2797_v27 = vand.u32 4294901760, %v2796_v23  ;;  %v2240_v26 = vand.u32 4294901760, %v2157_v25 }
 0x252   :  { %v2260_v38 = vand.u32 4294901760, %v2259_v33  ;;  %v8430_v41 = vpack.c.bf16 %v2259_v33, %v2252_v30  ;;  %v2255_v42 = vand.u32 4294901760, %v2254_v39 }
 0x253   :  { %v2801_v16 = vsub.f32 %v2696_v12, %v2709_v14  ;;  %v8426_v34 = vpack.c.bf16 %v2709_v14, %v2706_v15  ;;  %v1223_v15 = vand.u32 4294901760, %v1222_v11 }
 0x254   :  { %v2261_v40 = vsub.f32 %v2259_v33, %v2260_v38  ;;  %v8433_v44 = vpack.c.bf16 %v2260_v38, %v2253_v37 }
 0x255   :  { %v2802_v18 = vand.u32 4294901760, %v2801_v16  ;;  %v8428_v36 = vpack.c.bf16 %v2801_v16, %v2794_v17 }
 0x256   :  { %v2262_v43 = vand.u32 4294901760, %v2261_v40 }
 0x257   :  { %v2803_v22 = vsub.f32 %v2801_v16, %v2802_v18  ;;  %v8435_v45 = vpack.c.bf16 %v2802_v18, %v2795_v19  ;;  %v1224_v18 = vsub.f32 %v1222_v11, %v1223_v15 }
 0x258   :  { %v8437_v46 = vpack.c.bf16 %v2262_v43, %v2255_v42 }
 0x259   :  { %v2804_v29 = vand.u32 4294901760, %v2803_v22  ;;  %v1225_v21 = vand.u32 4294901760, %v1224_v18  ;;  %v2230_v22 = vand.u32 4294901760, %v2155_v7 }
 0x25b   :  { %v7632_v35 = vpack.c.bf16 %v2804_v29, %v2797_v27  ;;  %v2231_v23 = vsub.f32 %v2155_v7, %v2230_v22  ;;  %v2241_v29 = vsub.f32 %v2157_v25, %v2240_v26 }
 0x25d   :  { %7633 = vmatprep.subr.bf16.mxu0 %v7632_v35  ;;  %v2232_v27 = vand.u32 4294901760, %v2231_v23  ;;  %v2242_v30 = vand.u32 4294901760, %v2241_v29 }
 0x25e   :  { %7635 = vmatpush3.bf16.msra.mxu0 %v7632_v35 }
 0x25f   :  { %7637 = vmatprep.subr.bf16.mxu0 %v8428_v36  ;;  %v2233_v5 = vsub.f32 %v2231_v23, %v2232_v27  ;;  %v2243_v35 = vsub.f32 %v2241_v29, %v2242_v30 }
 0x261   :  { %v2234_v33 = vand.u32 4294901760, %v2233_v5  ;;  %v2244_v37 = vand.u32 4294901760, %v2243_v35 }
 0x319   :  { %v1114_v47 = vpop.f32.mrb[2].mxu1 }
 0x31a   :  { %v1119_v48 = vsel %vm1118_vm2, %v1114_v47, -inf  ;;  %v7081_v50 = vpop.f32.mrb[3].mxu1 }
 0x31b   :  { %v1120_v51 = vrot.slane %v1119_v48, 4 }
 0x31d   :  { %v1121_v52 = vmax.f32 %v1119_v48, %v1120_v51 }
 0x31f   :  { %v1122_v53 = vrot.slane %v1121_v52, 2 }
 0x321   :  { %v1123_v54 = vmax.f32 %v1121_v52, %v1122_v53 }
 0x323   :  { %v1124_v55 = vrot.slane %v1123_v54, 1 }
 0x325   :  { %v1125_v56 = vmax.f32 %v1123_v54, %v1124_v55 }
 0x327   :  { %v1126_v57 = vsub.f32 %v1114_v47, %v1125_v56 }
 0x329   :  { %v1127_v58 = vmul.f32 1.442695, %v1126_v57 }
 0x32b   :  { %7889 = vpow2.f32 %v1127_v58 }
 0x335   :  { %v7890_v59 = vpop.eup %7889 }
 0x336   :  { %v1129_v60 = vsel %vm1118_vm2, %v7890_v59, 0.0 }
 0x337   :  { %v1130_v61 = vrot.slane %v1129_v60, 4 }
 0x339   :  { %v1131_v62 = vadd.f32 %v1130_v61, %v1129_v60 }
 0x33b   :  { %v1132_v63 = vrot.slane %v1131_v62, 2 }
 0x33d   :  { %v1133_v0 = vadd.f32 %v1132_v63, %v1131_v62 }
 0x33f   :  { %v1134_v3 = vrot.slane %v1133_v0, 1 }
 0x341   :  { %v1135_v4 = vadd.f32 %v1134_v3, %v1133_v0 }
 0x343   :  { %7891 = vrcp.f32 %v1135_v4 }
 0x34d   :  { %v7892_v9 = vpop.eup %7891 }
 0x34e   :  { %v1137_v12 = vmul.f32 %v7892_v9, %v7890_v59 }
 0x350   :  { %v1142_v13 = vsel %vm1118_vm2, %v1137_v12, 0 }
 0x351   :  { %v1210_v14 = vand.u32 4294901760, %v1142_v13 }
 0x353   :  { %v1211_v16 = vsub.f32 %v1142_v13, %v1210_v14 }
 0x355   :  { %v1212_v17 = vand.u32 4294901760, %v1211_v16 }
 0x357   :  { %v1213_v19 = vsub.f32 %v1211_v16, %v1212_v17 }
 0x359   :  { %v1214_v20 = vand.u32 4294901760, %v1213_v19 }
 0x35b   :  { %7085 = vmatmul.mubr.f32.vlgmr.msra.gmra.mrb[4].mxu1 %v1214_v20 }
 0x35c   :  { %7088 = vmatpush3.msra.mxu1 %v1225_v21  ;;  %7089 = vmatprep.mubr.msk.f32.mxu1 %vm8108_vm0, %v8109_v2 }
 0x35d   :  { %7092 = vmatprep.subr.mxu1 %v8109_v2 }
 0x363   :  { %7090 = vmatmul.mubr.f32.vlgmr.msra.gmra.mrb[4].mxu1 %v1210_v14 }
 0x364   :  { %7093 = vmatpush3.msra.mxu1 %v1222_v11  ;;  %7094 = vmatprep.mubr.msk.f32.mxu1 %vm8108_vm0, %v8109_v2 }
 0x365   :  { %7097 = vmatprep.subr.mxu1 %v8109_v2 }
 0x36b   :  { %7095 = vmatmul.mubr.f32.vlgmr.msra.gmra.mrb[4].mxu1 %v1211_v16 }
 0x36c   :  { %7098 = vmatpush3.msra.mxu1 %v8414_v8  ;;  %7099 = vmatprep.mubr.msk.f32.mxu1 %vm8108_vm0, %v8109_v2 }
 0x36d   :  { %7102 = vmatprep.subr.mxu1 %v8109_v2 }
 0x373   :  { %7100 = vmatmul.mubr.f32.vlgmr.msra.gmra.mrb[4].mxu1 %v1212_v17 }
 0x374   :  { %7103 = vmatpush3.msra.mxu1 %v1223_v15  ;;  %7104 = vmatprep.mubr.msk.f32.mxu1 %vm8108_vm0, %v8109_v2 }
 0x375   :  { %7107 = vmatprep.subr.mxu1 %v8109_v2 }
 0x37b   :  { %7105 = vmatmul.mubr.f32.vlgmr.msra.gmra.mrb[4].mxu1 %v1210_v14 }
 0x37c   :  { %7108 = vmatpush3.msra.mxu1 %v8414_v8  ;;  %v1600_v8 = vsel %vm164_vm1, %v8477_v6, 0 }
 0x37d   :  { %7605 = vmatprep.subr.bf16.mxu1 %v8424_v31  ;;  %v1674_v38 = vand.u32 4294901760, %v1600_v8 }
 0x37f   :  { %v1675_v39 = vsub.f32 %v1600_v8, %v1674_v38 }
 0x381   :  { %v1676_v40 = vand.u32 4294901760, %v1675_v39 }
 0x383   :  { %7110 = vmatmul.mubr.f32.vlgmr.msra.gmra.mrb[4].mxu1 %v1210_v14 }
 0x384   :  { %7607 = vmatpush3.bf16.xpose.msra.mxu1 %v8424_v31  ;;  %7182 = vmatprep.mubr.f32.mxu1 %v2234_v33 }
 0x385   :  { %7609 = vmatprep.subr.bf16.mxu1 %v8437_v46 }
 0x38b   :  { %7183 = vmatmul.mubr.f32.vlgmr.msra.gmra.mrb[6].mxu1 %v2244_v37 }
 0x38c   :  { %7611 = vmatpush3.bf16.xpose.msra.mxu1 %v8437_v46  ;;  %7189 = vmatprep.mubr.f32.mxu1 %v2230_v22 }
 0x38d   :  { %7613 = vmatprep.subr.bf16.mxu1 %v8430_v41 }
 0x393   :  { %7190 = vmatmul.mubr.f32.vlgmr.msra.gmra.mrb[6].mxu1 %v2240_v26 }
 0x394   :  { %7615 = vmatpush3.bf16.xpose.msra.mxu1 %v8430_v41  ;;  %7196 = vmatprep.mubr.f32.mxu1 %v2231_v23  ;;  %v1677_v41 = vsub.f32 %v1675_v39, %v1676_v40 }
 0x395   :  { %7617 = vmatprep.subr.bf16.mxu1 %v8424_v31 }
 0x396   :  { %v1678_v42 = vand.u32 4294901760, %v1677_v41 }
 0x398   :  { %7120 = vmatprep.mubr.f32.mxu0 %v1678_v42 }
 0x399   :  { %7153 = vmatprep.mubr.f32.mxu0 %v1676_v40 }
 0x39a   :  { %7142 = vmatprep.mubr.f32.mxu0 %v1675_v39 }
 0x39b   :  { %7197 = vmatmul.mubr.f32.vlgmr.msra.gmra.mrb[6].mxu1 %v2241_v29  ;;  %7131 = vmatprep.mubr.f32.mxu0 %v1674_v38 }
 0x39c   :  { %7619 = vmatpush3.bf16.xpose.msra.mxu1 %v8424_v31  ;;  %7203 = vmatprep.mubr.f32.mxu1 %v2232_v27 }
 0x39d   :  { %7621 = vmatprep.subr.bf16.mxu1 %v8433_v44  ;;  %7164 = vmatprep.mubr.f32.mxu0 %v1674_v38 }
 0x39e   :  { %7175 = vmatprep.mubr.f32.mxu0 %v1674_v38 }
 0x3a3   :  { %7204 = vmatmul.mubr.f32.vlgmr.msra.gmra.mrb[6].mxu1 %v2242_v30 }
 0x3a4   :  { %7623 = vmatpush3.bf16.xpose.msra.mxu1 %v8433_v44  ;;  %7210 = vmatprep.mubr.f32.mxu1 %v2230_v22 }
 0x3a5   :  { %7625 = vmatprep.subr.bf16.mxu1 %v8424_v31 }
 0x3ab   :  { %7211 = vmatmul.mubr.f32.vlgmr.msra.gmra.mrb[6].mxu1 %v2240_v26 }
 0x3ac   :  { %7627 = vmatpush3.bf16.xpose.msra.mxu1 %v8424_v31  ;;  %7217 = vmatprep.mubr.f32.mxu1 %v2230_v22 }
 0x3ad   :  { %7629 = vmatprep.subr.bf16.mxu1 %v8426_v34 }
 0x3b3   :  { %7218 = vmatmul.mubr.f32.vlgmr.msra.gmra.mrb[6].mxu1 %v2240_v26 }
 0x3b4   :  { %7631 = vmatpush3.bf16.msra.mxu1 %v8426_v34 }
 0x3b5   :  { %7652 = vmatprep.subr.bf16.mxu1 %v8107_v1 }
 0x456   :  { %v8481_v31 = vpop.f32.mrb[4].mxu1 }
 0x457   :  { %v7111_v43 = vpop.f32.mrb[5].mxu1  ;;  %v7732_v33 = vadd.f32 %v8481_v31, %v8326_v10 }
 0x486   :  { %v7219_v44 = vpop.f32.mrb[6].mxu1 }
 0x487   :  { %v2667_v46 = vsel %vm2665_vm3, %v7219_v44, -inf  ;;  %v2655_v47 = vpop.f32.mrb[7].mxu1 }
 0x488   :  { %v2666_v48 = vsel %vm2665_vm3, %v2655_v47, -inf }
 0x489   :  { %v2668_v50 = vmax.f32 %v2666_v48, %v2667_v46 }
 0x48b   :  { %v2669_v51 = vrot.slane %v2668_v50, 4 }
 0x48d   :  { %v2670_v52 = vmax.f32 %v2668_v50, %v2669_v51 }
 0x48f   :  { %v2671_v53 = vrot.slane %v2670_v52, 2 }
 0x491   :  { %v2672_v54 = vmax.f32 %v2670_v52, %v2671_v53 }
 0x493   :  { %v2673_v55 = vrot.slane %v2672_v54, 1 }
 0x495   :  { %v2674_v56 = vmax.f32 %v2672_v54, %v2673_v55 }
 0x497   :  { %v2675_v57 = vsub.f32 %v2655_v47, %v2674_v56  ;;  %v2676_v58 = vsub.f32 %v7219_v44, %v2674_v56 }
 0x499   :  { %v2677_v59 = vmul.f32 1.442695, %v2675_v57  ;;  %v2679_v60 = vmul.f32 1.442695, %v2676_v58 }
 0x49b   :  { %7893 = vpow2.f32 %v2677_v59 }
 0x49c   :  { %7895 = vpow2.f32 %v2679_v60 }
 0x4a5   :  { %v7894_v61 = vpop.eup %7893 }
 0x4a6   :  { %v7896_v62 = vpop.eup %7895  ;;  %v2681_v63 = vsel %vm2665_vm3, %v7894_v61, 0.0 }
 0x4a7   :  { %v2682_v0 = vsel %vm2665_vm3, %v7896_v62, 0.0 }
 0x4a8   :  { %v2683_v3 = vadd.f32 %v2682_v0, %v2681_v63 }
 0x4aa   :  { %v2684_v4 = vrot.slane %v2683_v3, 4 }
 0x4ac   :  { %v2685_v9 = vadd.f32 %v2684_v4, %v2683_v3 }
 0x4ae   :  { %v2686_v11 = vrot.slane %v2685_v9, 2 }
 0x4b0   :  { %v2687_v12 = vadd.f32 %v2686_v11, %v2685_v9  ;;  %v3734_v9 = vld [vmem:[#allocation8] sm:$0xff]  ;;  %v3735_v11 = vld [vmem:[#allocation8 + $0x8] sm:$0xff] }
 0x4b2   :  { %v2688_v13 = vrot.slane %v2687_v12, 1 }
 0x4b4   :  { %v2689_v14 = vadd.f32 %v2688_v13, %v2687_v12  ;;  %v3745_v12 = vand.u32 4294901760, %v3734_v9  ;;  %v3748_v13 = vand.u32 4294901760, %v3735_v11 }
 0x4b6   :  { %7897 = vrcp.f32 %v2689_v14  ;;  %v7671_v14 = vpack.c.bf16 %v3748_v13, %v3745_v12 }
 0x4c0   :  { %v7898_v15 = vpop.eup %7897 }
 0x4c1   :  { %v2691_v16 = vmul.f32 %v7898_v15, %v7894_v61  ;;  %v2692_v17 = vmul.f32 %v7898_v15, %v7896_v62  ;;  %v3823_v15 = vsub.f32 %v3734_v9, %v3745_v12 }
 0x4c3   :  { %v2700_v18 = vsel %vm2665_vm3, %v2691_v16, 0  ;;  %v2703_v19 = vsel %vm2665_vm3, %v2692_v17, 0  ;;  %v3830_v16 = vsub.f32 %v3735_v11, %v3748_v13  ;;  %v3824_v17 = vand.u32 4294901760, %v3823_v15 }
 0x4c4   :  { %v2772_v20 = vand.u32 4294901760, %v2700_v18  ;;  %v2782_v21 = vand.u32 4294901760, %v2703_v19 }
 0x4c6   :  { %7231 = vmatprep.mubr.f32.mxu0 %v2772_v20  ;;  %v2783_v7 = vsub.f32 %v2703_v19, %v2782_v21  ;;  %v2773_v22 = vsub.f32 %v2700_v18, %v2772_v20  ;;  %v3831_v18 = vand.u32 4294901760, %v3830_v16  ;;  %v3825_v19 = vsub.f32 %v3823_v15, %v3824_v17 }
 0x4c7   :  { %7232 = vmatmul.mubr.f32.vlgmr.msra.gmra.mrb[4].mxu0 %v2782_v21 }
 0x4c8   :  { %7639 = vmatpush3.bf16.msra.mxu0 %v8428_v36  ;;  %7238 = vmatprep.mubr.f32.mxu0 %v2773_v22  ;;  %v2774_v23 = vand.u32 4294901760, %v2773_v22  ;;  %v2784_v25 = vand.u32 4294901760, %v2783_v7 }
 0x4c9   :  { %7641 = vmatprep.subr.bf16.mxu0 %v8426_v34 }
 0x4ca   :  { %v2775_v26 = vsub.f32 %v2773_v22, %v2774_v23  ;;  %v2785_v27 = vsub.f32 %v2783_v7, %v2784_v25 }
 0x4cc   :  { %v2776_v29 = vand.u32 4294901760, %v2775_v26  ;;  %v2786_v5 = vand.u32 4294901760, %v2785_v27 }
 0x4ce   :  { %7224 = vmatprep.mubr.f32.mxu1 %v2776_v29 }
 0x4cf   :  { %7225 = vmatmul.mubr.f32.vlgmr.msra.gmra.mrb[8].mxu1 %v2786_v5  ;;  %7239 = vmatmul.mubr.f32.vlgmr.msra.gmra.mrb[4].mxu0 %v2783_v7 }
 0x4d0   :  { %7643 = vmatpush3.bf16.msra.mxu0 %v8426_v34  ;;  %7245 = vmatprep.mubr.f32.mxu0 %v2774_v23  ;;  %v7677_v23 = vpack.c.bf16 %v3830_v16, %v3823_v15 }
 0x4d1   :  { %7645 = vmatprep.subr.bf16.mxu0 %v8435_v45  ;;  %7266 = vmatprep.mubr.msk.f32.mxu1 %vm8108_vm0, %v8109_v2 }
 0x4d7   :  { %7246 = vmatmul.mubr.f32.vlgmr.msra.gmra.mrb[4].mxu0 %v2784_v25  ;;  %v7683_v25 = vpack.c.bf16 %v3831_v18, %v3824_v17 }
 0x4d8   :  { %7647 = vmatpush3.bf16.msra.mxu0 %v8435_v45  ;;  %7252 = vmatprep.mubr.f32.mxu0 %v2772_v20  ;;  %v3208_v45 = vsel %vm164_vm1, %v7732_v33, 0 }
 0x4d9   :  { %7649 = vmatprep.subr.bf16.mxu0 %v8426_v34  ;;  %v3283_v35 = vand.u32 4294901760, %v3208_v45 }
 0x4db   :  { %v3284_v40 = vsub.f32 %v3208_v45, %v3283_v35 }
 0x4dd   :  { %v3285_v48 = vand.u32 4294901760, %v3284_v40 }
 0x4df   :  { %7253 = vmatmul.mubr.f32.vlgmr.msra.gmra.mrb[4].mxu0 %v2782_v21  ;;  %v3286_v58 = vsub.f32 %v3284_v40, %v3285_v48 }
 0x4e0   :  { %7651 = vmatpush3.bf16.msra.mxu0 %v8426_v34  ;;  %7259 = vmatprep.mubr.f32.mxu0 %v2772_v20  ;;  %v3832_v20 = vsub.f32 %v3830_v16, %v3831_v18 }
 0x4e1   :  { %7670 = vmatprep.subr.bf16.mxu0 %v8107_v1  ;;  %v3287_v63 = vand.u32 4294901760, %v3286_v58 }
 0x4e2   :  { %v3833_v7 = vand.u32 4294901760, %v3832_v20 }
 0x4e7   :  { %7260 = vmatmul.mubr.f32.vlgmr.msra.gmra.mrb[4].mxu0 %v2782_v21  ;;  %v3826_v21 = vand.u32 4294901760, %v3825_v19 }
 0x4e8   :  { %7308 = vmatprep.mubr.msk.f32.mxu0 %vm8108_vm0, %v8109_v2  ;;  %7672 = vmatpush3.bf16.msra.mxu0 %v7671_v14 }
 0x4e9   :  { %7673 = vmatprep.subr.bf16.mxu0 %v8107_v1  ;;  %v7674_v22 = vpack.c.bf16 %v3833_v7, %v3826_v21 }
 0x5a2   :  { %v7226_v36 = vpop.f32.mrb[8].mxu1 }
 0x5a3   :  { %v2778_v30 = vpop.f32.mrb[9].mxu1  ;;  %v2789_v37 = vadd.f32 %v7226_v36, %v8365_v49 }
 0x5a4   :  { %v2779_v8 = vadd.f32 %v2778_v30, %v8477_v6  ;;  %v3675_v6 = vmul.f32 %v7732_v33, %v7732_v33 }
 0x5a6   :  { %v3676_v57 = vsel %vm164_vm1, %v3675_v6, 0.0 }
 0x5ba   :  { %v7261_v34 = vpop.f32.mrb[4].mxu0 }
 0x5bb   :  { %v7736_v38 = vadd.f32 %v7261_v34, %v2789_v37  ;;  %v3197_v39 = vpop.f32.mrb[5].mxu0 }
 0x5bc   :  { %v7738_v41 = vadd.f32 %v3197_v39, %v2779_v8 }
 0x5bd   :  { %v3214_v42 = vsel %vm164_vm1, %v7736_v38, 0  ;;  %v3680_v43 = vmul.f32 %v7736_v38, %v7736_v38 }
 0x5be   :  { %v3220_v44 = vand.u32 4294901760, %v3214_v42  ;;  %v3211_v46 = vsel %vm164_vm1, %v7738_v41, 0  ;;  %v3679_v47 = vmul.f32 %v7738_v41, %v7738_v41 }
 0x5bf   :  { %v3217_v10 = vand.u32 4294901760, %v3211_v46  ;;  %v3684_v31 = vsel %vm164_vm1, %v3680_v43, 0.0 }
 0x5c0   :  { %v3302_v50 = vsub.f32 %v3214_v42, %v3220_v44  ;;  %3685 = vadd.xlane.f32.xlu1 %v3684_v31  ;;  %v3681_v49 = vsel %vm164_vm1, %v3679_v47, 0.0  ;;  %v3736_v47 = vld [vmem:[#allocation10] sm:$0x7] }
 0x5c1   :  { %v7653_v51 = vpack.c.bf16 %v3220_v44, %v3217_v10  ;;  %v3295_v52 = vsub.f32 %v3211_v46, %v3217_v10  ;;  %3682 = vadd.xlane.f32.xlu0 %v3681_v49  ;;  %v3740_v10 = vrot.slane %v3736_v47, %v8369_v24  ;;  %v4208_v6 = vrot.slane %v3736_v47, %v8372_v28 }
 0x5c2   :  { %v3303_v53 = vand.u32 4294901760, %v3302_v50 }
 0x5c3   :  { %v3296_v54 = vand.u32 4294901760, %v3295_v52  ;;  %7654 = vmatpush3.bf16.xpose.msra.mxu1 %v7653_v51  ;;  %v7659_v55 = vpack.c.bf16 %v3302_v50, %v3295_v52 }
 0x5c4   :  { %v3304_v56 = vsub.f32 %v3302_v50, %v3303_v53  ;;  %7655 = vmatprep.subr.bf16.mxu1 %v8107_v1 }
 0x5c5   :  { %v3297_v59 = vsub.f32 %v3295_v52, %v3296_v54  ;;  %3677 = vadd.xlane.f32.xlu0 %v3676_v57  ;;  %v7665_v60 = vpack.c.bf16 %v3303_v53, %v3296_v54  ;;  %v4213_v52 = vrot.slane %v3736_v47, %v8374_v32 }
 0x5c6   :  { %v3305_v61 = vand.u32 4294901760, %v3304_v56 }
 0x5c7   :  { %v3298_v62 = vand.u32 4294901760, %v3297_v59 }
 0x5c9   :  { %v7656_v0 = vpack.c.bf16 %v3305_v61, %v3298_v62 }
 0x5ca   :  { %7267 = vmatmul.mubr.f32.vlgmr.msra.gmra.mrb[10].mxu1 %v3287_v63 }
 0x5cb   :  { %7657 = vmatpush3.bf16.xpose.msra.mxu1 %v7656_v0  ;;  %7273 = vmatprep.mubr.msk.f32.mxu1 %vm8108_vm0, %v8109_v2 }
 0x5cc   :  { %7658 = vmatprep.subr.bf16.mxu1 %v8107_v1 }
 0x5d2   :  { %7274 = vmatmul.mubr.f32.vlgmr.msra.gmra.mrb[10].mxu1 %v3283_v35 }
 0x5d3   :  { %7660 = vmatpush3.bf16.xpose.msra.mxu1 %v7659_v55  ;;  %7280 = vmatprep.mubr.msk.f32.mxu1 %vm8108_vm0, %v8109_v2 }
 0x5d4   :  { %7661 = vmatprep.subr.bf16.mxu1 %v8107_v1 }
 0x5da   :  { %7281 = vmatmul.mubr.f32.vlgmr.msra.gmra.mrb[10].mxu1 %v3284_v40 }
 0x5db   :  { %7663 = vmatpush3.bf16.xpose.msra.mxu1 %v7653_v51  ;;  %7287 = vmatprep.mubr.msk.f32.mxu1 %vm8108_vm0, %v8109_v2 }
 0x5dc   :  { %7664 = vmatprep.subr.bf16.mxu1 %v8107_v1 }
 0x5e2   :  { %7288 = vmatmul.mubr.f32.vlgmr.msra.gmra.mrb[10].mxu1 %v3285_v48 }
 0x5e3   :  { %7666 = vmatpush3.bf16.xpose.msra.mxu1 %v7665_v60  ;;  %7294 = vmatprep.mubr.msk.f32.mxu1 %vm8108_vm0, %v8109_v2 }
 0x5e4   :  { %7667 = vmatprep.subr.bf16.mxu1 %v8107_v1 }
 0x5ea   :  { %7295 = vmatmul.mubr.f32.vlgmr.msra.gmra.mrb[10].mxu1 %v3283_v35 }
 0x5eb   :  { %7669 = vmatpush3.bf16.xpose.msra.mxu1 %v7653_v51  ;;  %7301 = vmatprep.mubr.msk.f32.mxu1 %vm8108_vm0, %v8109_v2 }
 0x5ec   :  { %7376 = vmatprep.subr.mxu1 %v8109_v2 }
 0x5f2   :  { %7302 = vmatmul.mubr.f32.vlgmr.msra.gmra.mrb[10].mxu1 %v3283_v35 }
 0x5f3   :  { %7378 = vmatprep.mubr.msk.f32.mxu1 %vm8108_vm0, %v8109_v2 }
 0x64d   :  { %v3686_v4 = vpop.xlane.xlu1 %3685 }
 0x64e   :  { %v3683_v3 = vpop.xlane.xlu0 %3682 }
 0x64f   :  { %3689 = vxpose.xlu0.b32.start [1/2] (short) (narrow) %v3683_v3, 8 }
 0x652   :  { %v3678_v29 = vpop.xlane.xlu0 %3677 }
 0x653   :  { %3690 = vxpose.xlu0.b32.end [2/2] (short) (narrow) %v3686_v4, 8 }
 0x6c5   :  { %v3671_v26 = vpop.f32.mrb[10].mxu1 }
 0x6c6   :  { %v7303_v27 = vpop.f32.mrb[11].mxu1  ;;  %v3687_v5 = vmul.f32 2.0, %v3671_v26 }
 0x6c8   :  { %v3688_v30 = vsub.f32 %v3678_v29, %v3687_v5 }
 0x6cf   :  { %v3705_v36 = vpop.trf.xlu0 }
 0x6d0   :  { %v3724_v33 = vrot.slane %v3705_v36, %v8369_v24 }
 0x6d2   :  { %v3725_v45 = vadd.f32 %v3724_v33, %v3688_v30 }
 0x6d4   :  { %v3726_v35 = vmax.f32 %v3725_v45, 0.0 }
 0x6d6   :  { %7899 = vrsqrt.f32 %v3726_v35  ;;  %vm3729_vm4 = vcmp.eq.f32.partialorder %v3726_v35, inf  ;;  %v3732_v34 = vand.u32 2147483648, %v3726_v35  ;;  %vm3731_vm5 = vcmp.eq.f32.partialorder %v3726_v35, 0.0 }
 0x6e0   :  { %v7900_v37 = vpop.eup %7899 }
 0x6e1   :  { %v3728_v8 = vmul.f32 %v7900_v37, %v3726_v35 }
 0x6e3   :  { %v3730_v38 = vsel %vm3729_vm4, %v3726_v35, %v3728_v8 }
 0x6e4   :  { %v8531_v39 = vsel %vm3731_vm5, %v3732_v34, %v3730_v38 }
 0x6e5   :  { %v3742_v40 = vsel %vm2665_vm3, %v8531_v39, 0 }
 0x6e6   :  { %v3811_v41 = vand.u32 4294901760, %v3742_v40 }
 0x6e8   :  { %v3812_v42 = vsub.f32 %v3742_v40, %v3811_v41 }
 0x6ea   :  { %v3813_v43 = vand.u32 4294901760, %v3812_v42 }
 0x6ec   :  { %v3814_v44 = vsub.f32 %v3812_v42, %v3813_v43 }
 0x6ee   :  { %v3815_v46 = vand.u32 4294901760, %v3814_v44  ;;  %v5141_v44 = vld [vmem:[#allocation11 + $0x8] sm:$0xff] }
 0x6ef   :  { %v5156_v47 = vand.u32 4294901760, %v5141_v44 }
 0x6f0   :  { %7309 = vmatmul.mubr.f32.vlgmr.msra.gmra.mrb[6].mxu0 %v3815_v46 }
 0x6f1   :  { %7675 = vmatpush3.bf16.msra.mxu0 %v7674_v22  ;;  %7315 = vmatprep.mubr.msk.f32.mxu0 %vm8108_vm0, %v8109_v2 }
 0x6f2   :  { %7676 = vmatprep.subr.bf16.mxu0 %v8107_v1 }
 0x6f8   :  { %7316 = vmatmul.mubr.f32.vlgmr.msra.gmra.mrb[6].mxu0 %v3811_v41 }
 0x6f9   :  { %7678 = vmatpush3.bf16.msra.mxu0 %v7677_v23  ;;  %7322 = vmatprep.mubr.msk.f32.mxu0 %vm8108_vm0, %v8109_v2 }
 0x6fa   :  { %7679 = vmatprep.subr.bf16.mxu0 %v8107_v1 }
 0x700   :  { %7323 = vmatmul.mubr.f32.vlgmr.msra.gmra.mrb[6].mxu0 %v3812_v42 }
 0x701   :  { %7681 = vmatpush3.bf16.msra.mxu0 %v7671_v14  ;;  %7329 = vmatprep.mubr.msk.f32.mxu0 %vm8108_vm0, %v8109_v2 }
 0x702   :  { %7682 = vmatprep.subr.bf16.mxu0 %v8107_v1 }
 0x708   :  { %7330 = vmatmul.mubr.f32.vlgmr.msra.gmra.mrb[6].mxu0 %v3813_v43  ;;  %v5140_v43 = vld [vmem:[#allocation11] sm:$0xff] }
 0x709   :  { %7684 = vmatpush3.bf16.msra.mxu0 %v7683_v25  ;;  %7336 = vmatprep.mubr.msk.f32.mxu0 %vm8108_vm0, %v8109_v2  ;;  %v5153_v46 = vand.u32 4294901760, %v5140_v43 }
 0x70a   :  { %7685 = vmatprep.subr.bf16.mxu0 %v8107_v1 }
 0x710   :  { %7337 = vmatmul.mubr.f32.vlgmr.msra.gmra.mrb[6].mxu0 %v3811_v41 }
 0x711   :  { %7687 = vmatpush3.bf16.msra.mxu0 %v7671_v14  ;;  %7343 = vmatprep.mubr.msk.f32.mxu0 %vm8108_vm0, %v8109_v2 }
 0x712   :  { %7346 = vmatprep.subr.mxu0 %v8109_v2 }
 0x718   :  { %7344 = vmatmul.mubr.f32.vlgmr.msra.gmra.mrb[6].mxu0 %v3811_v41 }
 0x719   :  { %7348 = vmatprep.mubr.msk.f32.mxu0 %vm8108_vm0, %v8109_v2 }
 0x7eb   :  { %v4199_v31 = vpop.f32.mrb[6].mxu0 }
 0x7ec   :  { %v7739_v48 = vadd.f32 %v4199_v31, %v3740_v10  ;;  %v7345_v50 = vpop.f32.mrb[7].mxu0  ;;  %v7689_v10 = vpack.c.bf16 %v5156_v47, %v5153_v46  ;;  %v5231_v31 = vsub.f32 %v5140_v43, %v5153_v46 }
 0x7ee   :  { %v4203_v49 = vmul.f32 0.01, %v7739_v48  ;;  %v5232_v50 = vand.u32 4294901760, %v5231_v31 }
 0x7f0   :  { %v4204_v51 = vmax.f32 %v7739_v48, %v4203_v49  ;;  %v5238_v48 = vsub.f32 %v5141_v44, %v5156_v47 }
 0x7f2   :  { %v4209_v53 = vmul.f32 %v4208_v6, %v4204_v51  ;;  %v5239_v49 = vand.u32 4294901760, %v5238_v48  ;;  %v5233_v6 = vsub.f32 %v5231_v31, %v5232_v50 }
 0x7f4   :  { %v4214_v54 = vadd.f32 %v4213_v52, %v4209_v53  ;;  %v5240_v51 = vsub.f32 %v5238_v48, %v5239_v49  ;;  %v5234_v52 = vand.u32 4294901760, %v5233_v6 }
 0x7f6   :  { %4216 = vrot.lane.b32.xlu1 %v4214_v54, %s8110_s4  ;;  %v4218_v55 = vsel %vm164_vm1, %v4214_v54, 0  ;;  %v5241_v53 = vand.u32 4294901760, %v5240_v51 }
 0x7f7   :  { %v4288_v56 = vand.u32 4294901760, %v4218_v55 }
 0x7f9   :  { %v4289_v57 = vsub.f32 %v4218_v55, %v4288_v56  ;;  %v7695_v55 = vpack.c.bf16 %v5238_v48, %v5231_v31  ;;  %v6667_v31 = vld [vmem:[%s8655_s12 + $0x8] sm:$0xff]  ;;  %v6666_v48 = vld [vmem:[%s8655_s12] sm:$0xff] }
 0x7fa   :  { %4687 = vrot.lane.b32.xlu1 %v4214_v54, %s8111_s26  ;;  %v7692_v54 = vpack.c.bf16 %v5241_v53, %v5234_v52 }
 0x7fb   :  { %v4290_v58 = vand.u32 4294901760, %v4289_v57 }
 0x7fd   :  { %v4291_v61 = vsub.f32 %v4289_v57, %v4290_v58 }
 0x7ff   :  { %v4292_v0 = vand.u32 4294901760, %v4291_v61 }
 0x868   :  { %v4217_v59 = vpop.permute.xlu1 %4216 }
 0x869   :  { %v4220_v60 = vsel %vm164_vm1, %v4217_v59, 0 }
 0x86a   :  { %v4223_v62 = vand.u32 4294901760, %v4220_v60 }
 0x86c   :  { %v4300_v28 = vsub.f32 %v4220_v60, %v4223_v62  ;;  %7347 = vmatpush3.xpose.msra.mxu0 %v4223_v62  ;;  %v4688_v63 = vpop.permute.xlu1 %4687 }
 0x86d   :  { %v8559_v32 = vand.u32 4294901760, %v4688_v63  ;;  %7351 = vmatprep.subr.mxu0 %v8109_v2 }
 0x86e   :  { %v4301_v3 = vand.u32 4294901760, %v4300_v28 }
 0x86f   :  { %7349 = vmatmul.mubr.f32.vlgmr.msra.gmra.mrb[8].mxu0 %v4292_v0  ;;  %7377 = vmatpush3.msra.mxu1 %v8559_v32  ;;  %v4771_v30 = vsub.f32 %v4688_v63, %v8559_v32 }
 0x870   :  { %v4302_v4 = vsub.f32 %v4300_v28, %v4301_v3  ;;  %7353 = vmatprep.mubr.msk.f32.mxu0 %vm8108_vm0, %v8109_v2  ;;  %7381 = vmatprep.subr.mxu1 %v8109_v2 }
 0x871   :  { %v4772_v37 = vand.u32 4294901760, %v4771_v30 }
 0x872   :  { %v4303_v9 = vand.u32 4294901760, %v4302_v4 }
 0x873   :  { %v4773_v38 = vsub.f32 %v4771_v30, %v4772_v37 }
 0x874   :  { %7352 = vmatpush3.xpose.msra.mxu0 %v4303_v9 }
 0x875   :  { %7356 = vmatprep.subr.mxu0 %v8109_v2  ;;  %v4774_v42 = vand.u32 4294901760, %v4773_v38 }
 0x877   :  { %7354 = vmatmul.mubr.f32.vlgmr.msra.gmra.mrb[8].mxu0 %v4288_v56 }
 0x878   :  { %7357 = vmatpush3.xpose.msra.mxu0 %v4300_v28  ;;  %7358 = vmatprep.mubr.msk.f32.mxu0 %vm8108_vm0, %v8109_v2 }
 0x879   :  { %7361 = vmatprep.subr.mxu0 %v8109_v2 }
 0x87f   :  { %7359 = vmatmul.mubr.f32.vlgmr.msra.gmra.mrb[8].mxu0 %v4289_v57 }
 0x880   :  { %7362 = vmatpush3.xpose.msra.mxu0 %v4223_v62  ;;  %7363 = vmatprep.mubr.msk.f32.mxu0 %vm8108_vm0, %v8109_v2 }
 0x881   :  { %7366 = vmatprep.subr.mxu0 %v8109_v2 }
 0x887   :  { %7364 = vmatmul.mubr.f32.vlgmr.msra.gmra.mrb[8].mxu0 %v4290_v58 }
 0x888   :  { %7367 = vmatpush3.xpose.msra.mxu0 %v4301_v3  ;;  %7368 = vmatprep.mubr.msk.f32.mxu0 %vm8108_vm0, %v8109_v2 }
 0x889   :  { %7371 = vmatprep.subr.mxu0 %v8109_v2 }
 0x88f   :  { %7369 = vmatmul.mubr.f32.vlgmr.msra.gmra.mrb[8].mxu0 %v4288_v56 }
 0x890   :  { %7372 = vmatpush3.xpose.msra.mxu0 %v4223_v62  ;;  %7373 = vmatprep.mubr.msk.f32.mxu0 %vm8108_vm0, %v8109_v2 }
 0x891   :  { %7688 = vmatprep.subr.bf16.mxu0 %v8107_v1 }
 0x897   :  { %7374 = vmatmul.mubr.f32.vlgmr.msra.gmra.mrb[8].mxu0 %v4288_v56  ;;  %v7701_v56 = vpack.c.bf16 %v5239_v49, %v5232_v50  ;;  %v8113_v50 = vmov 0   ;;  %v6689_v49 = vld [vmem:[#allocation2] sm:$0x1] }
 0x898   :  { %7410 = vmatprep.mubr.msk.f32.mxu0 %vm8108_vm0, %v8109_v2  ;;  %7690 = vmatpush3.bf16.msra.mxu0 %v7689_v10 }
 0x899   :  { %7691 = vmatprep.subr.bf16.mxu0 %v8107_v1  ;;  %7887 = vset.pattern.permute.xlu0 %v8113_v50 }
 0x89a   :  { %6670 = vperm.xlu0 %7887, %v6666_v48  }
 0x89e   :  { %6692 = vperm.xlu0 %7887, %v6689_v49  }
 0x96a   :  { %v4664_v11 = vpop.f32.mrb[8].mxu0 }
 0x96b   :  { %v4668_v12 = vsel %vm1118_vm2, %v4664_v11, -inf  ;;  %v7375_v13 = vpop.f32.mrb[9].mxu0 }
 0x96c   :  { %v4669_v14 = vrot.slane %v4668_v12, 4 }
 0x96e   :  { %v4670_v15 = vmax.f32 %v4668_v12, %v4669_v14 }
 0x970   :  { %v4671_v16 = vrot.slane %v4670_v15, 2 }
 0x972   :  { %v4672_v17 = vmax.f32 %v4670_v15, %v4671_v16 }
 0x974   :  { %v4673_v18 = vrot.slane %v4672_v17, 1 }
 0x976   :  { %v4674_v19 = vmax.f32 %v4672_v17, %v4673_v18 }
 0x978   :  { %v4675_v20 = vsub.f32 %v4664_v11, %v4674_v19 }
 0x97a   :  { %v4676_v21 = vmul.f32 1.442695, %v4675_v20 }
 0x97c   :  { %7901 = vpow2.f32 %v4676_v21 }
 0x986   :  { %v7902_v7 = vpop.eup %7901 }
 0x987   :  { %v4678_v22 = vsel %vm1118_vm2, %v7902_v7, 0.0 }
 0x988   :  { %v4679_v23 = vrot.slane %v4678_v22, 4 }
 0x98a   :  { %v4680_v25 = vadd.f32 %v4679_v23, %v4678_v22 }
 0x98c   :  { %v4681_v26 = vrot.slane %v4680_v25, 2 }
 0x98e   :  { %v4682_v27 = vadd.f32 %v4681_v26, %v4680_v25 }
 0x990   :  { %v4683_v29 = vrot.slane %v4682_v27, 1 }
 0x992   :  { %v4684_v5 = vadd.f32 %v4683_v29, %v4682_v27 }
 0x994   :  { %7903 = vrcp.f32 %v4684_v5 }
 0x99e   :  { %v7904_v36 = vpop.eup %7903 }
 0x99f   :  { %v4686_v33 = vmul.f32 %v7904_v36, %v7902_v7 }
 0x9a1   :  { %v4691_v45 = vsel %vm1118_vm2, %v4686_v33, 0  ;;  %v6146_v33 = vld [vmem:[#allocation13 + $0x8] sm:$0xff] }
 0x9a2   :  { %v4759_v35 = vand.u32 4294901760, %v4691_v45 }
 0x9a4   :  { %v4760_v8 = vsub.f32 %v4691_v45, %v4759_v35 }
 0x9a6   :  { %v4761_v34 = vand.u32 4294901760, %v4760_v8 }
 0x9a8   :  { %v4762_v40 = vsub.f32 %v4760_v8, %v4761_v34 }
 0x9aa   :  { %v4763_v41 = vand.u32 4294901760, %v4762_v40 }
 0x9ac   :  { %7379 = vmatmul.mubr.f32.vlgmr.msra.gmra.mrb[12].mxu1 %v4763_v41 }
 0x9ad   :  { %7382 = vmatpush3.msra.mxu1 %v4774_v42  ;;  %7383 = vmatprep.mubr.msk.f32.mxu1 %vm8108_vm0, %v8109_v2 }
 0x9ae   :  { %7386 = vmatprep.subr.mxu1 %v8109_v2 }
 0x9b4   :  { %7384 = vmatmul.mubr.f32.vlgmr.msra.gmra.mrb[12].mxu1 %v4759_v35 }
 0x9b5   :  { %7387 = vmatpush3.msra.mxu1 %v4771_v30  ;;  %7388 = vmatprep.mubr.msk.f32.mxu1 %vm8108_vm0, %v8109_v2  ;;  %v6145_v30 = vld [vmem:[#allocation13] sm:$0xff] }
 0x9b6   :  { %7391 = vmatprep.subr.mxu1 %v8109_v2  ;;  %v6161_v45 = vand.u32 4294901760, %v6145_v30 }
 0x9bc   :  { %7389 = vmatmul.mubr.f32.vlgmr.msra.gmra.mrb[12].mxu1 %v4760_v8  ;;  %v6249_v8 = vsub.f32 %v6145_v30, %v6161_v45 }
 0x9bd   :  { %7392 = vmatpush3.msra.mxu1 %v8559_v32  ;;  %7393 = vmatprep.mubr.msk.f32.mxu1 %vm8108_vm0, %v8109_v2 }
 0x9be   :  { %7396 = vmatprep.subr.mxu1 %v8109_v2  ;;  %v6250_v38 = vand.u32 4294901760, %v6249_v8 }
 0x9c0   :  { %v6251_v41 = vsub.f32 %v6249_v8, %v6250_v38 }
 0x9c2   :  { %v6252_v43 = vand.u32 4294901760, %v6251_v41 }
 0x9c4   :  { %7394 = vmatmul.mubr.f32.vlgmr.msra.gmra.mrb[12].mxu1 %v4761_v34 }
 0x9c5   :  { %7397 = vmatpush3.msra.mxu1 %v4772_v37  ;;  %7398 = vmatprep.mubr.msk.f32.mxu1 %vm8108_vm0, %v8109_v2 }
 0x9c6   :  { %7401 = vmatprep.subr.mxu1 %v8109_v2 }
 0x9cc   :  { %7399 = vmatmul.mubr.f32.vlgmr.msra.gmra.mrb[12].mxu1 %v4759_v35 }
 0x9cd   :  { %7402 = vmatpush3.msra.mxu1 %v8559_v32  ;;  %7403 = vmatprep.mubr.msk.f32.mxu1 %vm8108_vm0, %v8109_v2 }
 0x9d4   :  { %7404 = vmatmul.mubr.f32.vlgmr.msra.gmra.mrb[12].mxu1 %v4759_v35  ;;  %v6164_v35 = vand.u32 4294901760, %v6146_v33 }
 0x9d6   :  { %v7706_v37 = vpack.c.bf16 %v6164_v35, %v6161_v45  ;;  %v6256_v34 = vsub.f32 %v6146_v33, %v6164_v35 }
 0x9d8   :  { %v6257_v40 = vand.u32 4294901760, %v6256_v34  ;;  %v7714_v47 = vpack.c.bf16 %v6256_v34, %v6249_v8 }
 0x9da   :  { %v6258_v42 = vsub.f32 %v6256_v34, %v6257_v40 }
 0x9dc   :  { %v6259_v44 = vand.u32 4294901760, %v6258_v42 }
 0x9de   :  { %v7710_v46 = vpack.c.bf16 %v6259_v44, %v6252_v43 }
 0xaa7   :  { %v5135_v57 = vpop.f32.mrb[12].mxu1 }
 0xaa8   :  { %v7740_v58 = vadd.f32 %v5135_v57, %v8531_v39  ;;  %v7405_v59 = vpop.f32.mrb[13].mxu1  ;;  %v6726_v39 = vld [vmem:[%s8652_s9] ss:$0 sm:$0xff] }
 0xaaa   :  { %5139 = vst.msk [vmem:[%s8657_s14] sm:$0xff] %vm2665_vm3, %v7740_v58  ;;  %v5150_v60 = vsel %vm2665_vm3, %v7740_v58, 0 }
 0xaab   :  { %v5219_v61 = vand.u32 4294901760, %v5150_v60 }
 0xaad   :  { %v5220_v62 = vsub.f32 %v5150_v60, %v5219_v61 }
 0xaaf   :  { %v5221_v28 = vand.u32 4294901760, %v5220_v62 }
 0xab1   :  { %v5222_v63 = vsub.f32 %v5220_v62, %v5221_v28 }
 0xab3   :  { %v5223_v32 = vand.u32 4294901760, %v5222_v63  ;;  %v6727_v63 = vld [vmem:[#allocation14] ss:$0 sm:$0xff] }
 0xab5   :  { %7411 = vmatmul.mubr.f32.vlgmr.msra.gmra.mrb[10].mxu0 %v5223_v32 }
 0xab6   :  { %7693 = vmatpush3.bf16.msra.mxu0 %v7692_v54  ;;  %7417 = vmatprep.mubr.msk.f32.mxu0 %vm8108_vm0, %v8109_v2 }
 0xab7   :  { %7694 = vmatprep.subr.bf16.mxu0 %v8107_v1 }
 0xabd   :  { %7418 = vmatmul.mubr.f32.vlgmr.msra.gmra.mrb[10].mxu0 %v5219_v61 }
 0xabe   :  { %7696 = vmatpush3.bf16.msra.mxu0 %v7695_v55  ;;  %7424 = vmatprep.mubr.msk.f32.mxu0 %vm8108_vm0, %v8109_v2 }
 0xabf   :  { %7697 = vmatprep.subr.bf16.mxu0 %v8107_v1 }
 0xac5   :  { %7425 = vmatmul.mubr.f32.vlgmr.msra.gmra.mrb[10].mxu0 %v5220_v62 }
 0xac6   :  { %7699 = vmatpush3.bf16.msra.mxu0 %v7689_v10  ;;  %7431 = vmatprep.mubr.msk.f32.mxu0 %vm8108_vm0, %v8109_v2 }
 0xac7   :  { %7700 = vmatprep.subr.bf16.mxu0 %v8107_v1 }
 0xacd   :  { %7432 = vmatmul.mubr.f32.vlgmr.msra.gmra.mrb[10].mxu0 %v5221_v28 }
 0xace   :  { %7702 = vmatpush3.bf16.msra.mxu0 %v7701_v56  ;;  %7438 = vmatprep.mubr.msk.f32.mxu0 %vm8108_vm0, %v8109_v2 }
 0xacf   :  { %7703 = vmatprep.subr.bf16.mxu0 %v8107_v1 }
 0xad5   :  { %7439 = vmatmul.mubr.f32.vlgmr.msra.gmra.mrb[10].mxu0 %v5219_v61 }
 0xad6   :  { %7705 = vmatpush3.bf16.msra.mxu0 %v7689_v10  ;;  %7445 = vmatprep.mubr.msk.f32.mxu0 %vm8108_vm0, %v8109_v2  ;;  %v7722_v10 = vpack.c.bf16 %v6257_v40, %v6250_v38 }
 0xad7   :  { %7707 = vmatprep.subr.bf16.mxu0 %v7706_v37 }
 0xadd   :  { %7446 = vmatmul.mubr.f32.vlgmr.msra.gmra.mrb[10].mxu0 %v5219_v61 }
 0xade   :  { %7709 = vmatpush3.bf16.msra.mxu0 %v7706_v37 }
 0xadf   :  { %7711 = vmatprep.subr.bf16.mxu0 %v7710_v46 }
 0xbb0   :  { %v5607_v0 = vpop.f32.mrb[10].mxu0 }
 0xbb1   :  { %v7741_v3 = vadd.f32 %v6726_v39, %v5607_v0  ;;  %v7447_v4 = vpop.f32.mrb[11].mxu0 }
 0xbb3   :  { %7905 = vtanh.f32 %v7741_v3  ;;  %v5611_v11 = vmul.f32 0.01, %v7741_v3 }
 0xbb5   :  { %v5612_v12 = vmax.f32 %v7741_v3, %v5611_v11 }
 0xbbd   :  { %v7906_v9 = vpop.eup %7905 }
 0xbbe   :  { %5647 = vrot.lane.b32.xlu1 %v7906_v9, %s8112_s29 }
 0xbe7   :  { %5614 = vxpose.xlu1.b32.start.end [1/1] (short) (narrow) %v5612_v12, 16 }
 0xc05   :  { %7888 = vset.pattern.permute.xlu1 %v8113_v50 }
 0xc09   :  { %6675 = vperm.xlu1 %7888, %v6667_v31  }
 0xc30   :  { %v5648_v1 = vpop.permute.xlu1 %5647 }
 0xc31   :  { %v5657_v13 = vand.u32 4294901760, %v5648_v1 }
 0xc33   :  { %v5744_v14 = vsub.f32 %v5648_v1, %v5657_v13  ;;  %7448 = vmatprep.subr.mxu1 %v5657_v13 }
 0xc34   :  { %7449 = vmatpush3.msra.mxu1 %v5657_v13 }
 0xc35   :  { %v5745_v2 = vand.u32 4294901760, %v5744_v14 }
 0xc37   :  { %v5746_v15 = vsub.f32 %v5744_v14, %v5745_v2 }
 0xc39   :  { %v5747_v16 = vand.u32 4294901760, %v5746_v15 }
 0xc3b   :  { %7453 = vmatprep.subr.mxu1 %v5747_v16 }
 0xc67   :  { %v5630_v17 = vpop.trf.xlu1 }
 0xc68   :  { %v5651_v18 = vsel %vm1118_vm2, %v5630_v17, 0 }
 0xc69   :  { %v5722_v19 = vand.u32 4294901760, %v5651_v18 }
 0xc6b   :  { %v5723_v20 = vsub.f32 %v5651_v18, %v5722_v19  ;;  %v5631_v21 = vpop.trf.xlu1 }
 0xc6c   :  { %v5654_v7 = vsel %vm1118_vm2, %v5631_v21, 0 }
 0xc6d   :  { %v5724_v22 = vand.u32 4294901760, %v5723_v20  ;;  %v5732_v23 = vand.u32 4294901760, %v5654_v7 }
 0xc6f   :  { %v5733_v25 = vsub.f32 %v5654_v7, %v5732_v23  ;;  %v5725_v26 = vsub.f32 %v5723_v20, %v5724_v22 }
 0xc71   :  { %v5734_v27 = vand.u32 4294901760, %v5733_v25  ;;  %v5726_v29 = vand.u32 4294901760, %v5725_v26 }
 0xc73   :  { %v5735_v5 = vsub.f32 %v5733_v25, %v5734_v27  ;;  %7450 = vmatprep.mubr.f32.mxu1 %v5726_v29 }
 0xc75   :  { %v5736_v36 = vand.u32 4294901760, %v5735_v5 }
 0xc77   :  { %7451 = vmatmul.mubr.f32.vlgmr.msra.gmra.mrb[14].mxu1 %v5736_v36 }
 0xc78   :  { %7454 = vmatpush3.msra.mxu1 %v5747_v16  ;;  %7455 = vmatprep.mubr.f32.mxu1 %v5722_v19 }
 0xc79   :  { %7458 = vmatprep.subr.mxu1 %v5744_v14 }
 0xc7f   :  { %7456 = vmatmul.mubr.f32.vlgmr.msra.gmra.mrb[14].mxu1 %v5732_v23 }
 0xc80   :  { %7459 = vmatpush3.msra.mxu1 %v5744_v14  ;;  %7460 = vmatprep.mubr.f32.mxu1 %v5723_v20  ;;  %v6671_v14 = vpop.permute.xlu0 %6670 }
 0xc81   :  { %7463 = vmatprep.subr.mxu1 %v5657_v13 }
 0xc84   :  { %v6693_v7 = vpop.permute.xlu0 %6692 }
 0xc87   :  { %7461 = vmatmul.mubr.f32.vlgmr.msra.gmra.mrb[14].mxu1 %v5733_v25 }
 0xc88   :  { %7464 = vmatpush3.msra.mxu1 %v5657_v13  ;;  %7465 = vmatprep.mubr.f32.mxu1 %v5724_v22  ;;  %v6676_v11 = vpop.permute.xlu1 %6675 }
 0xc89   :  { %7468 = vmatprep.subr.mxu1 %v5745_v2 }
 0xc8f   :  { %7466 = vmatmul.mubr.f32.vlgmr.msra.gmra.mrb[14].mxu1 %v5734_v27 }
 0xc90   :  { %7469 = vmatpush3.msra.mxu1 %v5745_v2  ;;  %7470 = vmatprep.mubr.f32.mxu1 %v5722_v19 }
 0xc91   :  { %7473 = vmatprep.subr.mxu1 %v5657_v13 }
 0xc97   :  { %7471 = vmatmul.mubr.f32.vlgmr.msra.gmra.mrb[14].mxu1 %v5732_v23 }
 0xc98   :  { %7474 = vmatpush3.msra.mxu1 %v5657_v13  ;;  %7475 = vmatprep.mubr.f32.mxu1 %v5722_v19 }
 0xc9f   :  { %7476 = vmatmul.mubr.f32.vlgmr.msra.gmra.mrb[14].mxu1 %v5732_v23  ;;  %v6698_v23 = vrot.slane %v6693_v7, %v8369_v24 }
 0xd72   :  { %v7477_v6 = vpop.f32.mrb[14].mxu1 }
 0xd73   :  { %v6158_v51 = vsel %vm2665_vm3, %v7477_v6, 0  ;;  %v6135_v52 = vpop.f32.mrb[15].mxu1 }
 0xd74   :  { %v6237_v53 = vand.u32 4294901760, %v6158_v51  ;;  %v6155_v54 = vsel %vm2665_vm3, %v6135_v52, 0 }
 0xd75   :  { %v6227_v55 = vand.u32 4294901760, %v6155_v54 }
 0xd76   :  { %v6238_v56 = vsub.f32 %v6158_v51, %v6237_v53 }
 0xd77   :  { %v6228_v57 = vsub.f32 %v6155_v54, %v6227_v55 }
 0xd78   :  { %v6239_v58 = vand.u32 4294901760, %v6238_v56 }
 0xd79   :  { %v6229_v59 = vand.u32 4294901760, %v6228_v57 }
 0xd7a   :  { %v6240_v60 = vsub.f32 %v6238_v56, %v6239_v58 }
 0xd7b   :  { %v6230_v61 = vsub.f32 %v6228_v57, %v6229_v59 }
 0xd7c   :  { %v6241_v28 = vand.u32 4294901760, %v6240_v60 }
 0xd7d   :  { %v6231_v62 = vand.u32 4294901760, %v6230_v61 }
 0xd7f   :  { %7482 = vmatprep.mubr.f32.mxu0 %v6231_v62 }
 0xd80   :  { %7483 = vmatmul.mubr.f32.vlgmr.msra.gmra.mrb[12].mxu0 %v6241_v28 }
 0xd81   :  { %7489 = vmatprep.mubr.f32.mxu0 %v6227_v55  ;;  %7713 = vmatpush3.bf16.msra.mxu0 %v7710_v46 }
 0xd82   :  { %7715 = vmatprep.subr.bf16.mxu0 %v7714_v47 }
 0xd88   :  { %7490 = vmatmul.mubr.f32.vlgmr.msra.gmra.mrb[12].mxu0 %v6237_v53 }
 0xd89   :  { %7496 = vmatprep.mubr.f32.mxu0 %v6228_v57  ;;  %7717 = vmatpush3.bf16.msra.mxu0 %v7714_v47 }
 0xd8a   :  { %7719 = vmatprep.subr.bf16.mxu0 %v7706_v37 }
 0xd90   :  { %7497 = vmatmul.mubr.f32.vlgmr.msra.gmra.mrb[12].mxu0 %v6238_v56 }
 0xd91   :  { %7503 = vmatprep.mubr.f32.mxu0 %v6229_v59  ;;  %7721 = vmatpush3.bf16.msra.mxu0 %v7706_v37 }
 0xd92   :  { %7723 = vmatprep.subr.bf16.mxu0 %v7722_v10 }
 0xd98   :  { %7504 = vmatmul.mubr.f32.vlgmr.msra.gmra.mrb[12].mxu0 %v6239_v58 }
 0xd99   :  { %7510 = vmatprep.mubr.f32.mxu0 %v6227_v55  ;;  %7725 = vmatpush3.bf16.msra.mxu0 %v7722_v10 }
 0xd9a   :  { %7727 = vmatprep.subr.bf16.mxu0 %v7706_v37 }
 0xda0   :  { %7511 = vmatmul.mubr.f32.vlgmr.msra.gmra.mrb[12].mxu0 %v6237_v53 }
 0xda1   :  { %7517 = vmatprep.mubr.f32.mxu0 %v6227_v55  ;;  %7729 = vmatpush3.bf16.msra.mxu0 %v7706_v37 }
 0xda8   :  { %7518 = vmatmul.mubr.f32.vlgmr.msra.gmra.mrb[12].mxu0 %v6237_v53 }
 0xe7b   :  { %v7519_v32 = vpop.f32.mrb[12].mxu0 }
 0xe7c   :  { %v7742_v39 = vadd.f32 %v7519_v32, %v6727_v63  ;;  %v6652_v0 = vpop.f32.mrb[13].mxu0 }
 0xe7d   :  { %v7743_v3 = vadd.f32 %v6727_v63, %v6652_v0 }
 0xe7e   :  { %v6663_v4 = vmul.f32 0.01, %v7742_v39 }
 0xe7f   :  { %v6662_v9 = vmul.f32 0.01, %v7743_v3 }
 0xe80   :  { %v6665_v12 = vmax.f32 %v7742_v39, %v6663_v4 }
 0xe81   :  { %v6664_v1 = vmax.f32 %v7743_v3, %v6662_v9 }
 0xe82   :  { %v6679_v13 = vmul.f32 %v6676_v11, %v6665_v12 }
 0xe83   :  { %v6678_v2 = vmul.f32 %v6671_v14, %v6664_v1 }
 0xe84   :  { %v6681_v15 = vsel %vm2665_vm3, %v6679_v13, 0.0 }
 0xe85   :  { %v6680_v16 = vsel %vm2665_vm3, %v6678_v2, 0.0 }
 0xe86   :  { %v6682_v17 = vadd.f32 %v6681_v15, %v6680_v16 }
 0xe88   :  { %v6683_v18 = vrot.slane %v6682_v17, 4 }
 0xe8a   :  { %v6684_v19 = vadd.f32 %v6683_v18, %v6682_v17 }
 0xe8c   :  { %v6685_v20 = vrot.slane %v6684_v19, 2 }
 0xe8e   :  { %v6686_v21 = vadd.f32 %v6685_v20, %v6684_v19 }
 0xe90   :  { %v6687_v22 = vrot.slane %v6686_v21, 1 }
 0xe92   :  { %v6688_v25 = vadd.f32 %v6687_v22, %v6686_v21 }
 0xe94   :  { %v6699_v26 = vadd.f32 %v6698_v23, %v6688_v25 }
 0xe96   :  { %v6700_v27 = vsel %vm2665_vm3, %v6699_v26, -inf }
 0xe97   :  { %6701 = vmax.xlane.f32.xlu0 %v6700_v27 }
 0xf24   :  { %v6702_v29 = vpop.xlane.xlu0 %6701 }
 0xf25   :  { %v6703_v5 = vsub.f32 %v6699_v26, %v6702_v29 }
 0xf27   :  { %v6704_v36 = vmul.f32 1.442695, %v6703_v5 }
 0xf29   :  { %7907 = vpow2.f32 %v6704_v36 }
 0xf33   :  { %v7908_v30 = vpop.eup %7907 }
 0xf34   :  { %v6706_v33 = vsel %vm2665_vm3, %v7908_v30, 0.0 }
 0xf35   :  { %6707 = vadd.xlane.f32.xlu1 %v6706_v33 }
 0xfc2   :  { %v6708_v45 = vpop.xlane.xlu1 %6707 }
 0xfc3   :  { %7909 = vrcp.f32 %v6708_v45 }
 0xfcd   :  { %v7910_v35 = vpop.eup %7909 }
 0xfce   :  { %v6710_v37 = vmul.f32 %v7910_v35, %v7908_v30 }
 0xfd0   :  { %6712 = vst.msk [vmem:[%s8658_s15] sm:$0x1] %vm6711_vm6, %v6710_v37 }
 0xfd1   :  { %6721 = vsyncpa [#allocation4], 1 }
 0xfd2   :  { %6722 = vsyncpa [#allocation6], 1 }
 0xfd3   :  { %6723 = vsyncpa [#allocation9], 1 }
 0xfd4   :  { %6724 = vsyncpa [#allocation12], 1 }
 0xfd5   :  { %6725 = vsyncpa [#allocation15], 1 }

</bundles_post_ra>
